<compile_context>
chip_gen: v7x
topology: tpu7x:2x2x1
jax: 0.10.0
libtpu: 0.0.40
codegen_flags: <defaults>
</compile_context>

<pallas_src>
import jax
import jax.numpy as jnp
from jax.experimental import pallas as pl
from jax.experimental.pallas import tpu as pltpu

BN_EPS = 1e-5


def _round_up(x, m):
    return ((x + m - 1) // m) * m


def _elu(x):
    # ELU with alpha=1: x if x > 0 else exp(x) - 1
    return jnp.where(x > 0, x, jnp.exp(x) - 1.0)


# ---------------------------------------------------------------------------
# Kernel
# ---------------------------------------------------------------------------
def ingres2recipe_kernel(
    counts_ref,                    # (TB, V_pad) bf16  -- per-example tag counts
    inv_len_ref,                   # (TB, 1)     f32   -- 1/(c_len + 1e-10)
    emb_ref,                       # (V_pad, 2*E_pad) bf16  [emb_cap | emb_tag]
    w1_ref, b1_ref,                # (E_pad, H1) bf16, (1, H1) f32
    w2_ref, b2_ref,                # (H1, H2)  bf16 (BN1 folded), (1, H2) f32
    w3_ref, b3_ref,                # (H2, F)   bf16 (BN2 folded), (1, F)  f32
    cap_out_ref, tag_out_ref,      # outputs: (TB, F) f32, (TB, E_pad) f32
):
    E = tag_out_ref.shape[1]

    # ---- Embedding bag on the MXU: counts @ [emb_cap | emb_tag]. ----------
    # padding_idx=0 rows of the tables are zero, so index-0 counts are inert.
    bag = jnp.dot(counts_ref[...], emb_ref[...],
                  preferred_element_type=jnp.float32)          # (TB, 2E) f32

    tag_out_ref[...] = bag[:, E:]                               # tag sum path

    # ---- Length normalization fused into the bf16 cast for the MLP. -------
    x = (bag[:, :E] * inv_len_ref[...]).astype(jnp.bfloat16)    # (TB, E)

    # ---- MLP: bf16 MXU matmuls, f32 accumulation, f32 elementwise. --------
    # BatchNorms (eval mode) already folded into w2/b2 and w3/b3.
    h = jnp.dot(x, w1_ref[...],
                preferred_element_type=jnp.float32) + b1_ref[...]
    h = _elu(h)
    h = jnp.dot(h.astype(jnp.bfloat16), w2_ref[...],
                preferred_element_type=jnp.float32) + b2_ref[...]
    h = _elu(h)
    cap_out_ref[...] = jnp.dot(h.astype(jnp.bfloat16), w3_ref[...],
                               preferred_element_type=jnp.float32) + b3_ref[...]


# ---------------------------------------------------------------------------
# Parameter preparation: fold BN (eval mode), pad to lane multiples, cast.
# ---------------------------------------------------------------------------
def prepare_params(params):
    emb_dim = params["emb_cap"].shape[1]
    v_cap = params["emb_cap"].shape[0]
    v_tag = params["emb_tag"].shape[0]
    f_out = params["w3"].shape[1]

    E = _round_up(emb_dim, 128)
    V = _round_up(max(v_cap, v_tag), 128)
    H1 = _round_up(params["w1"].shape[1], 128)   # 500  -> 512
    H2 = _round_up(params["w2"].shape[1], 128)   # 1000 -> 1024
    F = _round_up(f_out, 128)

    def fold(bn):  # bn rows: [gamma, beta, running_mean, running_var]
        s = bn[0] / jnp.sqrt(bn[3] + BN_EPS)
        t = bn[1] - bn[2] * s
        return s, t

    # BN sits *after* the ELU, so fold it into the *following* Linear:
    #   lin2(bn1(h)) = h @ (s1[:,None]*W2) + (b2 + t1 @ W2)
    s1, t1 = fold(params["bn1"])
    s2, t2 = fold(params["bn2"])
    w2f = params["w2"] * s1[:, None]
    b2f = params["b2"] + (t1 @ params["w2"])[None, :]
    w3f = params["w3"] * s2[:, None]
    b3f = params["b3"] + (t2 @ params["w3"])[None, :]

    def pad2(a, rows, cols):
        return jnp.pad(a, ((0, rows - a.shape[0]), (0, cols - a.shape[1])))

    # Single combined embedding table (halves pinned VMEM vs two f32 tables).
    emb_comb = jnp.concatenate(
        [pad2(params["emb_cap"], V, E), pad2(params["emb_tag"], V, E)], axis=1)

    return dict(
        emb_dim=emb_dim, f_out=f_out, e_pad=E, v_pad=V, f_pad=F,
        emb=emb_comb.astype(jnp.bfloat16),                       # (V, 2E)
        w1=pad2(params["w1"], E, H1).astype(jnp.bfloat16),
        b1=pad2(params["b1"], 1, H1).astype(jnp.float32),
        w2=pad2(w2f, H1, H2).astype(jnp.bfloat16),
        b2=pad2(b2f, 1, H2).astype(jnp.float32),
        w3=pad2(w3f, H2, F).astype(jnp.bfloat16),
        b3=pad2(b3f, 1, F).astype(jnp.float32),
    )


# ---------------------------------------------------------------------------
# Forward wrapper
# ---------------------------------------------------------------------------
def _choose_tile_b(B):
    if B <= 8:
        return 8
    # >= 2 grid steps so both v7x TensorCores get work on the "parallel" axis;
    # cap at 256 to fill the 256-wide MXU on v6e/v7x (fine on v5e too).
    return min(_round_up(pl.cdiv(B, 2), 8), 256)


def ingres2recipe_forward(prepared, img_fea, captions, tags, c_lengths, t_lengths):
    """Mirrors Ingres2Recipe.forward (eval mode); returns (cap, cap, tags_sum, cap)."""
    # img_fea, captions, t_lengths are never used by the reference forward pass.
    del img_fea, captions, t_lengths

    B, _L = tags.shape
    E, V, F = prepared["e_pad"], prepared["v_pad"], prepared["f_pad"]

    TB = _choose_tile_b(B)
    B_pad = _round_up(B, TB)
    nb = B_pad // TB

    # Embedding bag as an MXU matmul: per-example tag-count histogram.
    # Counts are small integers (<= L), exactly representable in bf16.
    counts = jnp.zeros((B_pad, V), jnp.float32)
    counts = counts.at[jnp.arange(B)[:, None], tags.astype(jnp.int32)].add(1.0)
    counts = counts.astype(jnp.bfloat16)

    inv_len = (1.0 / (c_lengths.astype(jnp.float32) + 1e-10)).reshape(B, 1)
    inv_len = jnp.pad(inv_len, ((0, B_pad - B), (0, 0)), constant_values=1.0)

    pinned = (prepared["emb"],
              prepared["w1"], prepared["b1"],
              prepared["w2"], prepared["b2"],
              prepared["w3"], prepared["b3"])

    in_specs = [pl.BlockSpec((TB, V), lambda i: (i, 0)),   # counts
                pl.BlockSpec((TB, 1), lambda i: (i, 0))]   # inv_len
    # Grid-invariant operands (tables + weights): whole array, fixed block.
    in_specs += [pl.BlockSpec(w.shape, lambda i: (0, 0)) for w in pinned]

    cap_full, tag_full = pl.pallas_call(
        ingres2recipe_kernel,
        grid=(nb,),
        in_specs=in_specs,
        out_specs=(pl.BlockSpec((TB, F), lambda i: (i, 0)),
                   pl.BlockSpec((TB, E), lambda i: (i, 0))),
        out_shape=(jax.ShapeDtypeStruct((B_pad, F), jnp.float32),
                   jax.ShapeDtypeStruct((B_pad, E), jnp.float32)),
        compiler_params=pltpu.CompilerParams(
            dimension_semantics=("parallel",),
            vmem_limit_bytes=64 * 1024 * 1024),
    )(counts, inv_len, *pinned)

    cap = cap_full[:B, :prepared["f_out"]]
    tag_sum = tag_full[:B, :prepared["emb_dim"]]
    return cap, cap, tag_sum, cap


# ---------------------------------------------------------------------------
# PyTorch-equivalent parameter init + pure-JAX reference for verification
# ---------------------------------------------------------------------------
def init_params(key, vocab_cap_size, vocab_tag_size, emb_dim, img_fea_size):
    ks = jax.random.split(key, 5)

    def linear(k, fan_in, fan_out):
        kw, kb = jax.random.split(k)
        bound = 1.0 / jnp.sqrt(jnp.float32(fan_in))
        w = jax.random.uniform(kw, (fan_in, fan_out), jnp.float32, -bound, bound)
        b = jax.random.uniform(kb, (1, fan_out), jnp.float32, -bound, bound)
        return w, b

    emb_cap = jax.random.normal(ks[0], (vocab_cap_size, emb_dim), jnp.float32)
    emb_cap = emb_cap.at[0].set(0.0)  # padding_idx=0
    emb_tag = jax.random.normal(ks[1], (vocab_tag_size, emb_dim), jnp.float32)
    emb_tag = emb_tag.at[0].set(0.0)  # padding_idx=0

    w1, b1 = linear(ks[2], emb_dim, 500)
    w2, b2 = linear(ks[3], 500, 1000)
    w3, b3 = linear(ks[4], 1000, img_fea_size)

    def bn(n):  # rows: gamma, beta, running_mean, running_var (PyTorch defaults)
        return jnp.stack([jnp.ones(n), jnp.zeros(n),
                          jnp.zeros(n), jnp.ones(n)]).astype(jnp.float32)

    return dict(emb_cap=emb_cap, emb_tag=emb_tag,
                w1=w1, b1=b1, bn1=bn(500),
                w2=w2, b2=b2, bn2=bn(1000),
                w3=w3, b3=b3)


def reference_forward(params, tags, c_lengths):
    """Pure-JAX f32 reference (eval-mode dropout/BN) for correctness checking."""
    cap = jnp.take(params["emb_cap"], tags, axis=0).sum(axis=1)
    cap = cap / (c_lengths.astype(jnp.float32).reshape(-1, 1) + 1e-10)

    def bn(x, p):
        return (x - p[2]) / jnp.sqrt(p[3] + BN_EPS) * p[0] + p[1]

    h = bn(_elu(cap @ params["w1"] + params["b1"]), params["bn1"])
    h = bn(_elu(h @ params["w2"] + params["b2"]), params["bn2"])
    cap_out = h @ params["w3"] + params["b3"]
    tag_sum = jnp.take(params["emb_tag"], tags, axis=0).sum(axis=1)
    return cap_out, tag_sum


if __name__ == "__main__":
    B, L, EMB = 8, 12, 32
    V_CAP, V_TAG, F_IMG = 128, 96, 64

    key = jax.random.PRNGKey(0)
    k_p, k_tags, k_cap, k_len, k_img = jax.random.split(key, 5)

    params = init_params(k_p, V_CAP, V_TAG, EMB, F_IMG)
    prepared = prepare_params(params)

    tags = jax.random.randint(k_tags, (B, L), 0, V_TAG, dtype=jnp.int32)
    captions = jax.random.randint(k_cap, (B, L), 0, V_CAP, dtype=jnp.int32)  # unused
    c_lengths = jax.random.randint(k_len, (B,), 1, L + 1, dtype=jnp.int32)
    t_lengths = jnp.full((B,), L, dtype=jnp.int32)                           # unused
    img_fea = jax.random.normal(k_img, (B, F_IMG), jnp.float32)              # unused

    cap1, cap2, tag_sum, cap3 = ingres2recipe_forward(
        prepared, img_fea, captions, tags, c_lengths, t_lengths)
    jax.block_until_ready((cap1, cap2, tag_sum, cap3))

    ref_cap, ref_tag = reference_forward(params, tags, c_lengths)
    # Embedding tables / weights are bf16 on the MXU with f32 accumulation ->
    # compare with bf16-appropriate tolerances.
    assert jnp.allclose(cap1, ref_cap, atol=5e-2, rtol=5e-2)
    assert jnp.allclose(tag_sum, ref_tag, atol=1e-1, rtol=5e-2)

    print("KERNEL_OK")
</pallas_src>

<mosaic_0001>
module attributes {stable_mosaic.version = 11 : i64} {
  func.func @ingres2recipe_kernel(%arg0: i32, %arg1: memref<8x128xbf16, #tpu.memory_space<vmem>>, %arg2: memref<8x1xf32, #tpu.memory_space<vmem>>, %arg3: memref<128x256xbf16, #tpu.memory_space<vmem>>, %arg4: memref<128x512xbf16, #tpu.memory_space<vmem>>, %arg5: memref<1x512xf32, #tpu.memory_space<vmem>>, %arg6: memref<512x1024xbf16, #tpu.memory_space<vmem>>, %arg7: memref<1x1024xf32, #tpu.memory_space<vmem>>, %arg8: memref<1024x128xbf16, #tpu.memory_space<vmem>>, %arg9: memref<1x128xf32, #tpu.memory_space<vmem>>, %arg10: memref<8x128xf32, #tpu.memory_space<vmem>>, %arg11: memref<8x128xf32, #tpu.memory_space<vmem>>) attributes {dimension_semantics = [#tpu.dimension_semantics<parallel>], iteration_bounds = array<i64: 1>, scalar_prefetch = 0 : i64, scratch_operands = 0 : i64, tpu.core_type = #tpu.core_type<tc>, window_params = [{transform_indices = @transform_0, window_bounds = array<i64: 8, 128>}, {transform_indices = @transform_1, window_bounds = array<i64: 8, 1>}, {pipeline_mode = #tpu.pipeline_mode<synchronous>, transform_indices = @transform_2, window_bounds = array<i64: 128, 256>}, {pipeline_mode = #tpu.pipeline_mode<synchronous>, transform_indices = @transform_3, window_bounds = array<i64: 128, 512>}, {pipeline_mode = #tpu.pipeline_mode<synchronous>, transform_indices = @transform_4, window_bounds = array<i64: 1, 512>}, {pipeline_mode = #tpu.pipeline_mode<synchronous>, transform_indices = @transform_5, window_bounds = array<i64: 512, 1024>}, {pipeline_mode = #tpu.pipeline_mode<synchronous>, transform_indices = @transform_6, window_bounds = array<i64: 1, 1024>}, {pipeline_mode = #tpu.pipeline_mode<synchronous>, transform_indices = @transform_7, window_bounds = array<i64: 1024, 128>}, {pipeline_mode = #tpu.pipeline_mode<synchronous>, transform_indices = @transform_8, window_bounds = array<i64: 1, 128>}, {transform_indices = @transform_9, window_bounds = array<i64: 8, 128>}, {transform_indices = @transform_10, window_bounds = array<i64: 8, 128>}]} {
    %c0 = arith.constant 0 : index
    %c0_0 = arith.constant 0 : index
    %0 = vector.load %arg1[%c0, %c0_0] : memref<8x128xbf16, #tpu.memory_space<vmem>>, vector<8x128xbf16>
    %c0_1 = arith.constant 0 : index
    %c0_2 = arith.constant 0 : index
    %1 = vector.load %arg3[%c0_1, %c0_2] : memref<128x256xbf16, #tpu.memory_space<vmem>>, vector<128x256xbf16>
    %cst = arith.constant dense<0.000000e+00> : vector<8x256xf32>
    %2 = tpu.matmul %0, %1, %cst {dimension_numbers = #tpu.dot_dimension_numbers<[1], [0], [0], [1], [0, 0, 1, 1], [], []>} : vector<8x128xbf16>, vector<128x256xbf16>, vector<8x256xf32> -> vector<8x256xf32>
    %3 = vector.extract_strided_slice %2 {offsets = [0, 128], sizes = [8, 128], strides = [1, 1]} : vector<8x256xf32> to vector<8x128xf32>
    %c0_3 = arith.constant 0 : index
    %c0_4 = arith.constant 0 : index
    %4 = vector.load %arg11[%c0_3, %c0_4] : memref<8x128xf32, #tpu.memory_space<vmem>>, vector<8x128xf32>
    tpu.vector_store %arg11[%c0_3, %c0_4], %3 {strides = array<i32>} : memref<8x128xf32, #tpu.memory_space<vmem>>, vector<8x128xf32>,
    %5 = vector.extract_strided_slice %2 {offsets = [0, 0], sizes = [8, 128], strides = [1, 1]} : vector<8x256xf32> to vector<8x128xf32>
    %c0_5 = arith.constant 0 : index
    %c0_6 = arith.constant 0 : index
    %6 = vector.load %arg2[%c0_5, %c0_6] : memref<8x1xf32, #tpu.memory_space<vmem>>, vector<8x1xf32>
    %7 = vector.broadcast %6 : vector<8x1xf32> to vector<8x128xf32>
    %8 = arith.mulf %5, %7 : vector<8x128xf32>
    %9 = arith.truncf %8 : vector<8x128xf32> to vector<8x128xbf16>
    %c0_7 = arith.constant 0 : index
    %c0_8 = arith.constant 0 : index
    %10 = vector.load %arg4[%c0_7, %c0_8] : memref<128x512xbf16, #tpu.memory_space<vmem>>, vector<128x512xbf16>
    %cst_9 = arith.constant dense<0.000000e+00> : vector<8x512xf32>
    %11 = tpu.matmul %9, %10, %cst_9 {dimension_numbers = #tpu.dot_dimension_numbers<[1], [0], [0], [1], [0, 0, 1, 1], [], []>} : vector<8x128xbf16>, vector<128x512xbf16>, vector<8x512xf32> -> vector<8x512xf32>
    %c0_10 = arith.constant 0 : index
    %c0_11 = arith.constant 0 : index
    %12 = vector.load %arg5[%c0_10, %c0_11] : memref<1x512xf32, #tpu.memory_space<vmem>>, vector<1x512xf32>
    %13 = vector.broadcast %12 : vector<1x512xf32> to vector<8x512xf32>
    %14 = arith.addf %11, %13 : vector<8x512xf32>
    %cst_12 = arith.constant 0.000000e+00 : f32
    %15 = vector.broadcast %cst_12 : f32 to vector<8x512xf32>
    %16 = arith.cmpf ogt, %14, %15 : vector<8x512xf32>
    %17 = math.exp %14 : vector<8x512xf32>
    %cst_13 = arith.constant 1.000000e+00 : f32
    %18 = vector.broadcast %cst_13 : f32 to vector<8x512xf32>
    %19 = arith.subf %17, %18 : vector<8x512xf32>
    %20 = arith.select %16, %14, %19 : vector<8x512xi1>, vector<8x512xf32>
    %21 = arith.truncf %20 : vector<8x512xf32> to vector<8x512xbf16>
    %c0_14 = arith.constant 0 : index
    %c0_15 = arith.constant 0 : index
    %22 = vector.load %arg6[%c0_14, %c0_15] : memref<512x1024xbf16, #tpu.memory_space<vmem>>, vector<512x1024xbf16>
    %cst_16 = arith.constant dense<0.000000e+00> : vector<8x1024xf32>
    %23 = tpu.matmul %21, %22, %cst_16 {dimension_numbers = #tpu.dot_dimension_numbers<[1], [0], [0], [1], [0, 0, 1, 1], [], []>} : vector<8x512xbf16>, vector<512x1024xbf16>, vector<8x1024xf32> -> vector<8x1024xf32>
    %c0_17 = arith.constant 0 : index
    %c0_18 = arith.constant 0 : index
    %24 = vector.load %arg7[%c0_17, %c0_18] : memref<1x1024xf32, #tpu.memory_space<vmem>>, vector<1x1024xf32>
    %25 = vector.broadcast %24 : vector<1x1024xf32> to vector<8x1024xf32>
    %26 = arith.addf %23, %25 : vector<8x1024xf32>
    %cst_19 = arith.constant 0.000000e+00 : f32
    %27 = vector.broadcast %cst_19 : f32 to vector<8x1024xf32>
    %28 = arith.cmpf ogt, %26, %27 : vector<8x1024xf32>
    %29 = math.exp %26 : vector<8x1024xf32>
    %cst_20 = arith.constant 1.000000e+00 : f32
    %30 = vector.broadcast %cst_20 : f32 to vector<8x1024xf32>
    %31 = arith.subf %29, %30 : vector<8x1024xf32>
    %32 = arith.select %28, %26, %31 : vector<8x1024xi1>, vector<8x1024xf32>
    %33 = arith.truncf %32 : vector<8x1024xf32> to vector<8x1024xbf16>
    %c0_21 = arith.constant 0 : index
    %c0_22 = arith.constant 0 : index
    %34 = vector.load %arg8[%c0_21, %c0_22] : memref<1024x128xbf16, #tpu.memory_space<vmem>>, vector<1024x128xbf16>
    %cst_23 = arith.constant dense<0.000000e+00> : vector<8x128xf32>
    %35 = tpu.matmul %33, %34, %cst_23 {dimension_numbers = #tpu.dot_dimension_numbers<[1], [0], [0], [1], [0, 0, 1, 1], [], []>} : vector<8x1024xbf16>, vector<1024x128xbf16>, vector<8x128xf32> -> vector<8x128xf32>
    %c0_24 = arith.constant 0 : index
    %c0_25 = arith.constant 0 : index
    %36 = vector.load %arg9[%c0_24, %c0_25] : memref<1x128xf32, #tpu.memory_space<vmem>>, vector<1x128xf32>
    %37 = vector.broadcast %36 : vector<1x128xf32> to vector<8x128xf32>
    %38 = arith.addf %35, %37 : vector<8x128xf32>
    %c0_26 = arith.constant 0 : index
    %c0_27 = arith.constant 0 : index
    %39 = vector.load %arg10[%c0_26, %c0_27] : memref<8x128xf32, #tpu.memory_space<vmem>>, vector<8x128xf32>
    tpu.vector_store %arg10[%c0_26, %c0_27], %38 {strides = array<i32>} : memref<8x128xf32, #tpu.memory_space<vmem>>, vector<8x128xf32>,
    return
  }
  func.func @transform_0(%arg0: i32) -> (i32, i32) {
    %c0_i32 = arith.constant 0 : i32
    %c0_i32_0 = arith.constant 0 : i32
    return %arg0, %c0_i32 : i32, i32
  }
  func.func @transform_1(%arg0: i32) -> (i32, i32) {
    %c0_i32 = arith.constant 0 : i32
    %c0_i32_0 = arith.constant 0 : i32
    return %arg0, %c0_i32 : i32, i32
  }
  func.func @transform_2(%arg0: i32) -> (i32, i32) {
    %c0_i32 = arith.constant 0 : i32
    %c0_i32_0 = arith.constant 0 : i32
    %c0_i32_1 = arith.constant 0 : i32
    return %c0_i32, %c0_i32_0 : i32, i32
  }
  func.func @transform_3(%arg0: i32) -> (i32, i32) {
    %c0_i32 = arith.constant 0 : i32
    %c0_i32_0 = arith.constant 0 : i32
    %c0_i32_1 = arith.constant 0 : i32
    return %c0_i32, %c0_i32_0 : i32, i32
  }
  func.func @transform_4(%arg0: i32) -> (i32, i32) {
    %c0_i32 = arith.constant 0 : i32
    %c0_i32_0 = arith.constant 0 : i32
    %c0_i32_1 = arith.constant 0 : i32
    return %c0_i32, %c0_i32_0 : i32, i32
  }
  func.func @transform_5(%arg0: i32) -> (i32, i32) {
    %c0_i32 = arith.constant 0 : i32
    %c0_i32_0 = arith.constant 0 : i32
    %c0_i32_1 = arith.constant 0 : i32
    return %c0_i32, %c0_i32_0 : i32, i32
  }
  func.func @transform_6(%arg0: i32) -> (i32, i32) {
    %c0_i32 = arith.constant 0 : i32
    %c0_i32_0 = arith.constant 0 : i32
    %c0_i32_1 = arith.constant 0 : i32
    return %c0_i32, %c0_i32_0 : i32, i32
  }
  func.func @transform_7(%arg0: i32) -> (i32, i32) {
    %c0_i32 = arith.constant 0 : i32
    %c0_i32_0 = arith.constant 0 : i32
    %c0_i32_1 = arith.constant 0 : i32
    return %c0_i32, %c0_i32_0 : i32, i32
  }
  func.func @transform_8(%arg0: i32) -> (i32, i32) {
    %c0_i32 = arith.constant 0 : i32
    %c0_i32_0 = arith.constant 0 : i32
    %c0_i32_1 = arith.constant 0 : i32
    return %c0_i32, %c0_i32_0 : i32, i32
  }
  func.func @transform_9(%arg0: i32) -> (i32, i32) {
    %c0_i32 = arith.constant 0 : i32
    %c0_i32_0 = arith.constant 0 : i32
    return %arg0, %c0_i32 : i32, i32
  }
  func.func @transform_10(%arg0: i32) -> (i32, i32) {
    %c0_i32 = arith.constant 0 : i32
    %c0_i32_0 = arith.constant 0 : i32
    return %arg0, %c0_i32 : i32, i32
  }
}

</mosaic_0001>

<bundles_post_ra>
// kernel: tpu_custom_call.1
= control target key start
LH: loop header
LB: loop body
LE: loop exit
PB: predicated region body
PF: predicated region fallthrough
CT: control target
= control target key end

     0   :  { %16 = vsyncpa [#allocation3], 0  ;;  %s4524_s0 = inlined_call_operand.hbm [shape: bf16[8,128], index: 0, kind: input, shape index: {}]   ;;  %s4525_s1 = inlined_call_operand.hbm [shape: f32[8,1], index: 1, kind: input, shape index: {}]   ;;  %s4526_s2 = inlined_call_operand.hbm [shape: bf16[128,256], index: 2, kind: input, shape index: {}]   ;;  %s4527_s3 = inlined_call_operand.hbm [shape: bf16[128,512], index: 3, kind: input, shape index: {}]   ;;  %s4528_s4 = inlined_call_operand.hbm [shape: f32[1,512], index: 4, kind: input, shape index: {}]   ;;  %s4529_s5 = inlined_call_operand.hbm [shape: bf16[512,1024], index: 5, kind: input, shape index: {}]   ;;  %s4530_s6 = inlined_call_operand.hbm [shape: f32[1,1024], index: 6, kind: input, shape index: {}]   ;;  %s4531_s7 = inlined_call_operand.hbm [shape: bf16[1024,128], index: 7, kind: input, shape index: {}]   ;;  %s4532_s8 = inlined_call_operand.hbm [shape: f32[1,128], index: 8, kind: input, shape index: {}]   ;;  %s4533_s9 = inlined_call_operand.hbm [shape: f32[8,128], index: 9, kind: output, shape index: {0}]   ;;  %s4534_s10 = inlined_call_operand.hbm [shape: f32[8,128], index: 10, kind: output, shape index: {1}]  }
   0x1   :  { %17 = vsyncpa [#allocation6], 0 }
   0x2   :  { %18 = vsyncpa [#allocation9], 0 }
   0x3   :  { %19 = vsyncpa [#allocation12], 0 }
   0x4   :  { %20 = vsyncpa [#allocation15], 0 }
   0x5   :  { %21 = vsyncpa [#allocation4], 0 }
   0x6   :  { %22 = vsyncpa [#allocation19], 0  ;;  %s4213_s13 = smov [#allocation5]   ;;  %s4214_s15 = smov [#allocation8]  }
   0x7   :  { %s39_s14 = sshll.u32 %s4213_s13, 4  ;;  %s60_s16 = sshll.u32 %s4214_s15, 4  ;;  %s40_s14 = int_to_ptr.vmem [resolvable:$true] %s39_s14  ;;  %s4288_s16 = int_to_ptr.vmem [resolvable:$true] %s60_s16 }
   0x8   :  { %s3957_s19 = scalar_lea.hbm %s4525_s1, 128 }
   0x9   :  { %p3958_p0 = scmp.ne.s32.totalorder %s4525_s1, %s3957_s19  ;;  %p3961_p1 = scmp.lt.u32.totalorder %s3957_s19, %s4525_s1 }
   0xb   :  { %p3963_p2 = pnand %p3961_p1, %p3958_p0 }
   0xd   :  { %3966 = shalt.err (!%p3963_p2)
}
   0xe   :  { %s3967_s24 = scalar_lea.vmem %s40_s14, 128  ;;  %p3972_p4 = scmp.lt.s32.totalorder %s40_s14, %s40_s14 }
   0xf   :  { %p3968_p3 = scmp.ne.s32.totalorder %s40_s14, %s3967_s24  ;;  %p3973_p5 = scmp.lt.s32.totalorder %s3967_s24, %s3967_s24 }
  0x11   :  { %p3974_p6 = por %p3973_p5, %p3972_p4 }
  0x13   :  { %p3975_p7 = pnand %p3974_p6, %p3968_p3 }
  0x15   :  { %3978 = shalt.err (!%p3975_p7)
}
  0x16   :  { %42 = dma.hbm_to_vmem [thread:$0]  %s4525_s1, 128, %s40_s14, [#allocation6]  }
  0x17   :  { %s3979_s29 = scalar_lea.hbm %s4527_s3, 4096 }
  0x18   :  { %p3980_p8 = scmp.ne.s32.totalorder %s4527_s3, %s3979_s29  ;;  %p3983_p9 = scmp.lt.u32.totalorder %s3979_s29, %s4527_s3 }
  0x1a   :  { %p3985_p10 = pnand %p3983_p9, %p3980_p8 }
  0x1c   :  { %3988 = shalt.err (!%p3985_p10)
}
  0x1d   :  { %s3989_s15 = scalar_lea.vmem %s4288_s16, 4096  ;;  %p3994_p12 = scmp.lt.s32.totalorder %s4288_s16, %s4288_s16 }
  0x1e   :  { %p3990_p11 = scmp.ne.s32.totalorder %s4288_s16, %s3989_s15  ;;  %p3995_p13 = scmp.lt.s32.totalorder %s3989_s15, %s3989_s15 }
  0x20   :  { %p3996_p0 = por %p3995_p13, %p3994_p12 }
  0x22   :  { %p3997_p1 = pnand %p3996_p0, %p3990_p11 }
  0x24   :  { %4000 = shalt.err (!%p3997_p1)
}
  0x25   :  { %s4215_s1 = smov 256   ;;  %s4216_s14 = smov 16  }
  0x26   :  { %66 = dma.hbm_to_vmem [thread:$0]  %s4527_s3, 4096, %s4288_s16, [#allocation9], %s4215_s1, %s4215_s1, %s4216_s14  }
  0x27   :  { %s4217_s19 = smov [#allocation11]   ;;  %s4001_s23 = scalar_lea.hbm %s4529_s5, 32768 }
  0x28   :  { %s82_s20 = sshll.u32 %s4217_s19, 4  ;;  %p4002_p2 = scmp.ne.s32.totalorder %s4529_s5, %s4001_s23  ;;  %s83_s20 = int_to_ptr.vmem [resolvable:$true] %s82_s20 }
  0x29   :  { %p4005_p3 = scmp.lt.u32.totalorder %s4001_s23, %s4529_s5 }
  0x2b   :  { %p4007_p4 = pnand %p4005_p3, %p4002_p2 }
  0x2d   :  { %4010 = shalt.err (!%p4007_p4)
}
  0x2e   :  { %s4011_s28 = scalar_lea.vmem %s83_s20, 32768  ;;  %p4016_p6 = scmp.lt.s32.totalorder %s83_s20, %s83_s20 }
  0x2f   :  { %p4012_p5 = scmp.ne.s32.totalorder %s83_s20, %s4011_s28  ;;  %p4017_p7 = scmp.lt.s32.totalorder %s4011_s28, %s4011_s28 }
  0x31   :  { %p4018_p8 = por %p4017_p7, %p4016_p6 }
  0x33   :  { %p4019_p9 = pnand %p4018_p8, %p4012_p5 }
  0x35   :  { %4022 = shalt.err (!%p4019_p9)
}
  0x36   :  { %s4218_s3 = smov 512   ;;  %s4219_s16 = smov 32  }
  0x37   :  { %88 = dma.hbm_to_vmem [thread:$0]  %s4529_s5, 32768, %s83_s20, [#allocation12], %s4218_s3, %s4218_s3, %s4219_s16  }
  0x38   :  { %s4220_s11 = smov [#allocation14]   ;;  %s4023_s1 = scalar_lea.hbm %s4531_s7, 8192 }
  0x39   :  { %s104_s12 = sshll.u32 %s4220_s11, 4  ;;  %p4024_p10 = scmp.ne.s32.totalorder %s4531_s7, %s4023_s1  ;;  %s105_s12 = int_to_ptr.vmem [resolvable:$true] %s104_s12 }
  0x3a   :  { %p4027_p11 = scmp.lt.u32.totalorder %s4023_s1, %s4531_s7 }
  0x3c   :  { %p4029_p12 = pnand %p4027_p11, %p4024_p10 }
  0x3e   :  { %4032 = shalt.err (!%p4029_p12)
}
  0x3f   :  { %s4033_s21 = scalar_lea.vmem %s105_s12, 8192  ;;  %p4038_p0 = scmp.lt.s32.totalorder %s105_s12, %s105_s12 }
  0x40   :  { %p4034_p13 = scmp.ne.s32.totalorder %s105_s12, %s4033_s21  ;;  %p4039_p1 = scmp.lt.s32.totalorder %s4033_s21, %s4033_s21 }
  0x42   :  { %p4040_p2 = por %p4039_p1, %p4038_p0 }
  0x44   :  { %p4041_p3 = pnand %p4040_p2, %p4034_p13 }
  0x46   :  { %4044 = shalt.err (!%p4041_p3)
}
  0x47   :  { %s4221_s5 = smov 64   ;;  %s4222_s20 = smov 4  }
  0x48   :  { %110 = dma.hbm_to_vmem [thread:$0]  %s4531_s7, 8192, %s105_s12, [#allocation15], %s4221_s5, %s4221_s5, %s4222_s20  }
  0x49   :  { %s4223_s24 = smov [#allocation2]   ;;  %s4224_s26 = smov [#allocation7]  }
  0x4a   :  { %s29_s25 = sshll.u32 %s4223_s24, 4  ;;  %s48_s27 = sshll.u32 %s4224_s26, 4  ;;  %s30_s25 = int_to_ptr.vmem [resolvable:$true] %s29_s25  ;;  %s4343_s27 = int_to_ptr.vmem [resolvable:$true] %s48_s27 }
  0x4b   :  { %s4045_s16 = scalar_lea.hbm %s4524_s0, 64 }
  0x4c   :  { %p4046_p4 = scmp.ne.s32.totalorder %s4524_s0, %s4045_s16  ;;  %p4049_p5 = scmp.lt.u32.totalorder %s4045_s16, %s4524_s0 }
  0x4e   :  { %p4051_p6 = pnand %p4049_p5, %p4046_p4 }
  0x50   :  { %4054 = shalt.err (!%p4051_p6)
}
  0x51   :  { %s4055_s7 = scalar_lea.vmem %s30_s25, 64  ;;  %p4060_p8 = scmp.lt.s32.totalorder %s30_s25, %s30_s25 }
  0x52   :  { %p4056_p7 = scmp.ne.s32.totalorder %s30_s25, %s4055_s7  ;;  %p4061_p9 = scmp.lt.s32.totalorder %s4055_s7, %s4055_s7 }
  0x54   :  { %p4062_p10 = por %p4061_p9, %p4060_p8 }
  0x56   :  { %p4063_p11 = pnand %p4062_p10, %p4056_p7 }
  0x58   :  { %4066 = shalt.err (!%p4063_p11)
}
  0x59   :  { %32 = dma.hbm_to_vmem [thread:$0]  %s4524_s0, 64, %s30_s25, [#allocation3]  }
  0x5a   :  { %s4067_s17 = scalar_lea.hbm %s4526_s2, 2048 }
  0x5b   :  { %p4068_p12 = scmp.ne.s32.totalorder %s4526_s2, %s4067_s17  ;;  %p4071_p13 = scmp.lt.u32.totalorder %s4067_s17, %s4526_s2 }
  0x5d   :  { %p4073_p0 = pnand %p4071_p13, %p4068_p12 }
  0x5f   :  { %4076 = shalt.err (!%p4073_p0)
}
  0x60   :  { %s4077_s20 = scalar_lea.vmem %s4343_s27, 2048  ;;  %p4082_p2 = scmp.lt.s32.totalorder %s4343_s27, %s4343_s27 }
  0x61   :  { %p4078_p1 = scmp.ne.s32.totalorder %s4343_s27, %s4077_s20  ;;  %p4083_p3 = scmp.lt.s32.totalorder %s4077_s20, %s4077_s20 }
  0x63   :  { %p4084_p4 = por %p4083_p3, %p4082_p2 }
  0x65   :  { %p4085_p5 = pnand %p4084_p4, %p4078_p1 }
  0x67   :  { %4088 = shalt.err (!%p4085_p5)
}
  0x68   :  { %s4225_s0 = smov 128   ;;  %s4226_s22 = smov 8  }
  0x69   :  { %54 = dma.hbm_to_vmem [thread:$0]  %s4526_s2, 2048, %s4343_s27, [#allocation6], %s4225_s0, %s4225_s0, %s4226_s22  }
  0x6a   :  { %s4227_s25 = smov [#allocation10]   ;;  %s4228_s28 = smov [#allocation13]  }
  0x6b   :  { %s73_s26 = sshll.u32 %s4227_s25, 4  ;;  %s95_s3 = sshll.u32 %s4228_s28, 4  ;;  %s74_s26 = int_to_ptr.vmem [resolvable:$true] %s73_s26  ;;  %s96_s3 = int_to_ptr.vmem [resolvable:$true] %s95_s3 }
  0x6c   :  { %s4089_s30 = scalar_lea.hbm %s4528_s4, 64 }
  0x6d   :  { %p4090_p6 = scmp.ne.s32.totalorder %s4528_s4, %s4089_s30  ;;  %p4093_p7 = scmp.lt.u32.totalorder %s4089_s30, %s4528_s4 }
  0x6f   :  { %p4095_p8 = pnand %p4093_p7, %p4090_p6 }
  0x71   :  { %4098 = shalt.err (!%p4095_p8)
}
  0x72   :  { %s4099_s2 = scalar_lea.vmem %s74_s26, 64  ;;  %p4104_p10 = scmp.lt.s32.totalorder %s74_s26, %s74_s26 }
  0x73   :  { %p4100_p9 = scmp.ne.s32.totalorder %s74_s26, %s4099_s2  ;;  %p4105_p11 = scmp.lt.s32.totalorder %s4099_s2, %s4099_s2 }
  0x75   :  { %p4106_p12 = por %p4105_p11, %p4104_p10 }
  0x77   :  { %p4107_p13 = pnand %p4106_p12, %p4100_p9 }
  0x79   :  { %4110 = shalt.err (!%p4107_p13)
}
  0x7a   :  { %76 = dma.hbm_to_vmem [thread:$0]  %s4528_s4, 64, %s74_s26, [#allocation9]  }
  0x7b   :  { %s4111_s17 = scalar_lea.hbm %s4530_s6, 128 }
  0x7c   :  { %p4112_p0 = scmp.ne.s32.totalorder %s4530_s6, %s4111_s17  ;;  %p4115_p1 = scmp.lt.u32.totalorder %s4111_s17, %s4530_s6 }
  0x7e   :  { %p4117_p2 = pnand %p4115_p1, %p4112_p0 }
  0x80   :  { %4120 = shalt.err (!%p4117_p2)
}
  0x81   :  { %s4121_s20 = scalar_lea.vmem %s96_s3, 128  ;;  %p4126_p4 = scmp.lt.s32.totalorder %s96_s3, %s96_s3 }
  0x82   :  { %p4122_p3 = scmp.ne.s32.totalorder %s96_s3, %s4121_s20  ;;  %p4127_p5 = scmp.lt.s32.totalorder %s4121_s20, %s4121_s20 }
  0x84   :  { %p4128_p6 = por %p4127_p5, %p4126_p4 }
  0x86   :  { %p4129_p7 = pnand %p4128_p6, %p4122_p3 }
  0x88   :  { %4132 = shalt.err (!%p4129_p7)
}
  0x89   :  { %98 = dma.hbm_to_vmem [thread:$0]  %s4530_s6, 128, %s96_s3, [#allocation12]  }
  0x8a   :  { %s4229_s22 = smov [#allocation16]   ;;  %s4133_s26 = scalar_lea.hbm %s4532_s8, 16 }
  0x8b   :  { %s117_s23 = sshll.u32 %s4229_s22, 4  ;;  %p4134_p8 = scmp.ne.s32.totalorder %s4532_s8, %s4133_s26  ;;  %s118_s23 = int_to_ptr.vmem [resolvable:$true] %s117_s23 }
  0x8c   :  { %p4137_p9 = scmp.lt.u32.totalorder %s4133_s26, %s4532_s8 }
  0x8e   :  { %p4139_p10 = pnand %p4137_p9, %p4134_p8 }
  0x90   :  { %4142 = shalt.err (!%p4139_p10)
}
  0x91   :  { %s4143_s11 = scalar_lea.vmem %s118_s23, 16  ;;  %s4147_s6 = scalar_lea.vmem %s118_s23, 32 }
  0x92   :  { %p4144_p11 = scmp.ne.s32.totalorder %s118_s23, %s4143_s11  ;;  %p4148_p12 = scmp.lt.s32.totalorder %s118_s23, %s118_s23 }
  0x93   :  { %p4149_p13 = scmp.lt.s32.totalorder %s4147_s6, %s4143_s11 }
  0x95   :  { %p4150_p0 = por %p4149_p13, %p4148_p12 }
  0x97   :  { %p4151_p1 = pnand %p4150_p0, %p4144_p11 }
  0x99   :  { %4154 = shalt.err (!%p4151_p1)
}
  0x9a   :  { %120 = dma.hbm_to_vmem [thread:$0]  %s4532_s8, 16, %s118_s23, [#allocation15]  }
  0x9b   :  { %4199 = dma.done.wait [#allocation3], 64  }
  0x9c   :  { %4200 = vsyncadd [#allocation3], 4294967232 }
  0x9d   :  { %4201 = dma.done.wait [#allocation6], 2176  }
  0x9e   :  { %4202 = vsyncadd [#allocation6], 4294965120 }
  0x9f   :  { %4203 = dma.done.wait [#allocation9], 4160  }
  0xa0   :  { %4204 = vsyncadd [#allocation9], 4294963136 }
  0xa1   :  { %4205 = dma.done.wait [#allocation12], 32896  }
  0xa2   :  { %4206 = vsyncadd [#allocation12], 4294934400 }
  0xa3   :  { %4207 = dma.done.wait [#allocation15], 8208  }
  0xa4   :  { %4208 = vsyncadd [#allocation15], 4294959088  ;;  %v4230_v0 = vmov 0   ;;  %v3797_v1 = vld [vmem:[#allocation7 + $0x4] ss:$8 sps:$4 sm:$0xff]   ;;  %v288_v10 = vld [vmem:[#allocation5] sm:$0xff] }
  0xa5   :  { %278 = vmatprep.mubr.bf16.mxu0 %v4230_v0  ;;  %3796 = vset.pattern.permute.xlu0 %v4230_v0  ;;  %v3799_v2 = vld [vmem:[#allocation7] ss:$8 sps:$4 sm:$0xff]   ;;  %v3800_v3 = vld [vmem:[#allocation7 + $0x14] ss:$8 sps:$4 sm:$0xff]   ;;  %v3802_v4 = vld [vmem:[#allocation7 + $0x10] ss:$8 sps:$4 sm:$0xff]  }
  0xa6   :  { %542 = vmatprep.mubr.bf16.mxu1 %v4230_v0  ;;  %246 = vmatprep.subr.bf16.mxu0 %v3797_v1  ;;  %v3803_v5 = vld [vmem:[#allocation7 + $0x24] ss:$8 sps:$4 sm:$0xff]   ;;  %v3805_v6 = vld [vmem:[#allocation7 + $0x20] ss:$8 sps:$4 sm:$0xff]   ;;  %v3806_v7 = vld [vmem:[#allocation7 + $0x34] ss:$8 sps:$4 sm:$0xff]  }
  0xa7   :  { %247 = vmatpush1.bf16.msra.mxu0 %v3799_v2  ;;  %v3808_v8 = vld [vmem:[#allocation7 + $0x30] ss:$8 sps:$4 sm:$0xff]   ;;  %v3809_v9 = vld [vmem:[#allocation7 + $0x44] ss:$8 sps:$4 sm:$0xff]   ;;  %291 = vperm.xlu0 %3796, %v288_v10   ;;  %v3811_v14 = vld [vmem:[#allocation7 + $0x40] ss:$8 sps:$4 sm:$0xff]  }
  0xa8   :  { %248 = vmatprep.subr.bf16.mxu0 %v3800_v3  ;;  %v3821_v11 = vld [vmem:[#allocation8 + $0x4] ss:$16 sps:$4 sm:$0xff]   ;;  %v3826_v12 = vld [vmem:[#allocation8] ss:$16 sps:$4 sm:$0xff]   ;;  %v3825_v27 = vld [vmem:[#allocation8 + $0xc] ss:$16 sps:$4 sm:$0xff]  }
  0xa9   :  { %510 = vmatprep.subr.bf16.mxu1 %v3821_v11  ;;  %v3827_v13 = vld [vmem:[#allocation8 + $0x24] ss:$16 sps:$4 sm:$0xff]   ;;  %v3832_v16 = vld [vmem:[#allocation8 + $0x20] ss:$16 sps:$4 sm:$0xff]   ;;  %v3823_v31 = vld [vmem:[#allocation8 + $0x8] ss:$16 sps:$4 sm:$0xff]  }
  0xaa   :  { %511 = vmatpush1.bf16.msra.mxu1 %v3826_v12  ;;  %v3812_v15 = vld [vmem:[#allocation7 + $0x54] ss:$8 sps:$4 sm:$0xff]   ;;  %v3814_v18 = vld [vmem:[#allocation7 + $0x50] ss:$8 sps:$4 sm:$0xff]   ;;  %v3815_v19 = vld [vmem:[#allocation7 + $0x64] ss:$8 sps:$4 sm:$0xff]  }
  0xab   :  { %249 = vmatpush1.bf16.msra.mxu0 %v3802_v4  ;;  %512 = vmatprep.subr.bf16.mxu1 %v3827_v13  ;;  %v3833_v17 = vld [vmem:[#allocation8 + $0x44] ss:$16 sps:$4 sm:$0xff]   ;;  %v3838_v20 = vld [vmem:[#allocation8 + $0x40] ss:$16 sps:$4 sm:$0xff]   ;;  %v3831_v33 = vld [vmem:[#allocation8 + $0x2c] ss:$16 sps:$4 sm:$0xff]  }
  0xac   :  { %250 = vmatprep.subr.bf16.mxu0 %v3803_v5  ;;  %v3839_v21 = vld [vmem:[#allocation8 + $0x64] ss:$16 sps:$4 sm:$0xff]   ;;  %v3817_v22 = vld [vmem:[#allocation7 + $0x60] ss:$8 sps:$4 sm:$0xff]   ;;  %v3820_v26 = vld [vmem:[#allocation7 + $0x70] ss:$8 sps:$4 sm:$0xff]  }
  0xad   :  { %v3844_v23 = vld [vmem:[#allocation8 + $0x60] ss:$16 sps:$4 sm:$0xff]   ;;  %v3818_v24 = vld [vmem:[#allocation7 + $0x74] ss:$8 sps:$4 sm:$0xff]   ;;  %v3829_v35 = vld [vmem:[#allocation8 + $0x28] ss:$16 sps:$4 sm:$0xff]  }
  0xae   :  { %513 = vmatpush1.bf16.msra.mxu1 %v3832_v16  ;;  %v3845_v25 = vld [vmem:[#allocation8 + $0x84] ss:$16 sps:$4 sm:$0xff]   ;;  %v3850_v28 = vld [vmem:[#allocation8 + $0x80] ss:$16 sps:$4 sm:$0xff]   ;;  %v3837_v37 = vld [vmem:[#allocation8 + $0x4c] ss:$16 sps:$4 sm:$0xff]  }
  0xaf   :  { %251 = vmatpush1.bf16.msra.mxu0 %v3805_v6  ;;  %514 = vmatprep.subr.bf16.mxu1 %v3833_v17  ;;  %v3851_v29 = vld [vmem:[#allocation8 + $0xa4] ss:$16 sps:$4 sm:$0xff]   ;;  %v3856_v32 = vld [vmem:[#allocation8 + $0xa0] ss:$16 sps:$4 sm:$0xff]   ;;  %v3835_v38 = vld [vmem:[#allocation8 + $0x48] ss:$16 sps:$4 sm:$0xff]  }
  0xb0   :  { %252 = vmatprep.subr.bf16.mxu0 %v3806_v7  ;;  %v149_v30 = vld [vmem:[#allocation2] sm:$0xf]  ;;  %v3862_v36 = vld [vmem:[#allocation8 + $0xc0] ss:$16 sps:$4 sm:$0xff]   ;;  %v3843_v39 = vld [vmem:[#allocation8 + $0x6c] ss:$16 sps:$4 sm:$0xff]  }
  0xb1   :  { %v3857_v34 = vld [vmem:[#allocation8 + $0xc4] ss:$16 sps:$4 sm:$0xff]   ;;  %v3841_v40 = vld [vmem:[#allocation8 + $0x68] ss:$16 sps:$4 sm:$0xff]   ;;  %v3849_v41 = vld [vmem:[#allocation8 + $0x8c] ss:$16 sps:$4 sm:$0xff]  }
  0xb2   :  { %515 = vmatpush1.bf16.msra.mxu1 %v3838_v20  ;;  %v3847_v42 = vld [vmem:[#allocation8 + $0x88] ss:$16 sps:$4 sm:$0xff]   ;;  %v3855_v43 = vld [vmem:[#allocation8 + $0xac] ss:$16 sps:$4 sm:$0xff]   ;;  %v3863_v47 = vld [vmem:[#allocation8 + $0xe4] ss:$16 sps:$4 sm:$0xff]  }
  0xb3   :  { %253 = vmatpush1.bf16.msra.mxu0 %v3808_v8  ;;  %516 = vmatprep.subr.bf16.mxu1 %v3839_v21  ;;  %v3853_v44 = vld [vmem:[#allocation8 + $0xa8] ss:$16 sps:$4 sm:$0xff]   ;;  %v3861_v45 = vld [vmem:[#allocation8 + $0xcc] ss:$16 sps:$4 sm:$0xff]   ;;  %v3868_v50 = vld [vmem:[#allocation8 + $0xe0] ss:$16 sps:$4 sm:$0xff]  }
  0xb4   :  { %254 = vmatprep.subr.bf16.mxu0 %v3809_v9  ;;  %v3859_v46 = vld [vmem:[#allocation8 + $0xc8] ss:$16 sps:$4 sm:$0xff]   ;;  %v3867_v48 = vld [vmem:[#allocation8 + $0xec] ss:$16 sps:$4 sm:$0xff]   ;;  %s4231_s8 = smov [#allocation18]  }
  0xb5   :  { %v3865_v49 = vld [vmem:[#allocation8 + $0xe8] ss:$16 sps:$4 sm:$0xff]   ;;  %v617_v53 = vld [vmem:[#allocation11 + $0x8] sm:$0xff]  ;;  %s3266_s7 = sshll.u32 %s4231_s8, 4  ;;  %s3267_s7 = int_to_ptr.vmem [resolvable:$true] %s3266_s7 }
  0xb6   :  { %517 = vmatpush1.bf16.msra.mxu1 %v3844_v23  ;;  %v616_v51 = vld [vmem:[#allocation11] sm:$0xff]  ;;  %v621_v56 = vld [vmem:[#allocation11 + $0x28] sm:$0xff]  ;;  %s4155_s12 = scalar_lea.vmem %s3267_s7, 128  ;;  %p4160_p3 = scmp.lt.s32.totalorder %s3267_s7, %s3267_s7 }
  0xb7   :  { %255 = vmatpush1.bf16.msra.mxu0 %v3811_v14  ;;  %518 = vmatprep.subr.bf16.mxu1 %v3845_v25  ;;  %v620_v52 = vld [vmem:[#allocation11 + $0x20] sm:$0xff]  ;;  %v3337_v57 = vcombine.low %v617_v53, %v621_v56  ;;  %v3338_v58 = vcombine.high %v617_v53, %v621_v56  ;;  %v625_v63 = vld [vmem:[#allocation11 + $0x48] sm:$0xff]  ;;  %p4156_p2 = scmp.ne.s32.totalorder %s3267_s7, %s4155_s12  ;;  %p4161_p4 = scmp.lt.s32.totalorder %s4155_s12, %s4155_s12 }
  0xb8   :  { %256 = vmatprep.subr.bf16.mxu0 %v3812_v15  ;;  %v3335_v54 = vcombine.low %v616_v51, %v620_v52  ;;  %v3336_v55 = vcombine.high %v616_v51, %v620_v52  ;;  %v624_v60 = vld [vmem:[#allocation11 + $0x40] sm:$0xff]  ;;  %v633_v10 = vld [vmem:[#allocation11 + $0x88] sm:$0xff] }
  0xb9   :  { %v628_v62 = vld [vmem:[#allocation11 + $0x60] sm:$0xff]  ;;  %v637_v11 = vld [vmem:[#allocation11 + $0xa8] sm:$0xff]  ;;  %p4162_p5 = por %p4161_p4, %p4160_p3 }
  0xba   :  { %519 = vmatpush1.bf16.msra.mxu1 %v3850_v28  ;;  %v3344_v6 = vcombine.high %v624_v60, %v628_v62  ;;  %v632_v8 = vld [vmem:[#allocation11 + $0x80] sm:$0xff]  ;;  %v3343_v12 = vcombine.low %v624_v60, %v628_v62  ;;  %v3354_v15 = vcombine.high %v633_v10, %v637_v11  ;;  %v3353_v21 = vcombine.low %v633_v10, %v637_v11  ;;  %v677_v51 = vld [vmem:[#allocation11 + $0x1e8] sm:$0xff] }
  0xbb   :  { %257 = vmatpush1.bf16.msra.mxu0 %v3814_v18  ;;  %520 = vmatprep.subr.bf16.mxu1 %v3851_v29  ;;  %v636_v9 = vld [vmem:[#allocation11 + $0xa0] sm:$0xff]  ;;  %v641_v18 = vld [vmem:[#allocation11 + $0xc8] sm:$0xff]  ;;  %p4163_p6 = pnand %p4162_p5, %p4156_p2 }
  0xbc   :  { %258 = vmatprep.subr.bf16.mxu0 %v3815_v19  ;;  %v3352_v14 = vcombine.high %v632_v8, %v636_v9  ;;  %v640_v16 = vld [vmem:[#allocation11 + $0xc0] sm:$0xff]  ;;  %v645_v19 = vld [vmem:[#allocation11 + $0xe8] sm:$0xff]  ;;  %v3351_v20 = vcombine.low %v632_v8, %v636_v9 }
  0xbd   :  { %v644_v17 = vld [vmem:[#allocation11 + $0xe0] sm:$0xff]  ;;  %v3362_v23 = vcombine.high %v641_v18, %v645_v19  ;;  %v3361_v29 = vcombine.low %v641_v18, %v645_v19  ;;  %v697_v10 = vld [vmem:[#allocation11 + $0x288] sm:$0xff] }
  0xbe   :  { %521 = vmatpush1.bf16.msra.mxu1 %v3856_v32  ;;  %v652_v25 = vld [vmem:[#allocation11 + $0x120] sm:$0xff]  ;;  %v3359_v28 = vcombine.low %v640_v16, %v644_v17  ;;  %v701_v11 = vld [vmem:[#allocation11 + $0x2a8] sm:$0xff] }
  0xbf   :  { %259 = vmatpush1.bf16.msra.mxu0 %v3817_v22  ;;  %522 = vmatprep.subr.bf16.mxu1 %v3857_v34  ;;  %v3360_v22 = vcombine.high %v640_v16, %v644_v17  ;;  %v656_v32 = vld [vmem:[#allocation11 + $0x140] sm:$0xff]  ;;  %v657_v34 = vld [vmem:[#allocation11 + $0x148] sm:$0xff]  ;;  %v3417_v17 = vcombine.low %v697_v10, %v701_v11 }
  0xc0   :  { %260 = vmatprep.subr.bf16.mxu0 %v3818_v24  ;;  %v648_v24 = vld [vmem:[#allocation11 + $0x100] sm:$0xff] }
  0xc1   :  { %v680_v56 = vld [vmem:[#allocation11 + $0x200] sm:$0xff] }
  0xc2   :  { %523 = vmatpush1.bf16.msra.mxu1 %v3862_v36  ;;  %v3367_v36 = vcombine.low %v648_v24, %v652_v25  ;;  %v696_v8 = vld [vmem:[#allocation11 + $0x280] sm:$0xff] }
  0xc3   :  { %261 = vmatpush1.bf16.msra.mxu0 %v3820_v26  ;;  %524 = vmatprep.subr.bf16.mxu1 %v3863_v47  ;;  %v649_v26 = vld [vmem:[#allocation11 + $0x108] sm:$0xff]  ;;  %v700_v9 = vld [vmem:[#allocation11 + $0x2a0] sm:$0xff] }
  0xc4   :  { %551 = vmatprep.subr.bf16.mxu0 %v3825_v27  ;;  %v653_v27 = vld [vmem:[#allocation11 + $0x128] sm:$0xff]  ;;  %v3415_v16 = vcombine.low %v696_v8, %v700_v9  ;;  %v704_v18 = vld [vmem:[#allocation11 + $0x2c0] sm:$0xff] }
  0xc5   :  { %v708_v19 = vld [vmem:[#allocation11 + $0x2e0] sm:$0xff] }
  0xc6   :  { %279 = vmatmul.mubr.bf16.vlgmr.msra.gmra.mrb[0].mxu0 %v149_v30  ;;  %525 = vmatpush1.bf16.msra.mxu1 %v3868_v50  ;;  %v3368_v30 = vcombine.high %v648_v24, %v652_v25  ;;  %v673_v50 = vld [vmem:[#allocation11 + $0x1c8] sm:$0xff] }
  0xc7   :  { %552 = vmatpush1.bf16.msra.mxu0 %v3823_v31  ;;  %583 = vmatprep.mubr.bf16.mxu0 %v4230_v0  ;;  %v629_v0 = vld [vmem:[#allocation11 + $0x68] sm:$0xff]  ;;  %v3370_v31 = vcombine.high %v649_v26, %v653_v27 }
  0xc8   :  { %553 = vmatprep.subr.bf16.mxu0 %v3831_v33  ;;  %2194 = vmatprep.subr.bf16.mxu1 %v3336_v55  ;;  %v3346_v7 = vcombine.high %v625_v63, %v629_v0  ;;  %v3345_v13 = vcombine.low %v625_v63, %v629_v0  ;;  %v660_v33 = vld [vmem:[#allocation11 + $0x160] sm:$0xff]  ;;  %v3394_v55 = vcombine.high %v673_v50, %v677_v51 }
  0xc9   :  { %v688_v0 = vld [vmem:[#allocation11 + $0x240] sm:$0xff] }
  0xcb   :  { %554 = vmatpush1.bf16.msra.mxu0 %v3829_v35  ;;  %v661_v35 = vld [vmem:[#allocation11 + $0x168] sm:$0xff] }
  0xcc   :  { %555 = vmatprep.subr.bf16.mxu0 %v3837_v37  ;;  %v3369_v37 = vcombine.low %v649_v26, %v653_v27  ;;  %v712_v26 = vld [vmem:[#allocation11 + $0x300] sm:$0xff] }
  0xcd   :  { %v716_v27 = vld [vmem:[#allocation11 + $0x320] sm:$0xff] }
  0xcf   :  { %556 = vmatpush1.bf16.msra.mxu0 %v3835_v38  ;;  %v3376_v38 = vcombine.high %v656_v32, %v660_v33 }
  0xd0   :  { %557 = vmatprep.subr.bf16.mxu0 %v3843_v39  ;;  %v3378_v39 = vcombine.high %v657_v34, %v661_v35 }
  0xd3   :  { %558 = vmatpush1.bf16.msra.mxu0 %v3841_v40  ;;  %v664_v40 = vld [vmem:[#allocation11 + $0x180] sm:$0xff] }
  0xd4   :  { %559 = vmatprep.subr.bf16.mxu0 %v3849_v41  ;;  %v668_v41 = vld [vmem:[#allocation11 + $0x1a0] sm:$0xff] }
  0xd5   :  { %v3383_v52 = vcombine.low %v664_v40, %v668_v41 }
  0xd7   :  { %560 = vmatpush1.bf16.msra.mxu0 %v3847_v42  ;;  %v665_v42 = vld [vmem:[#allocation11 + $0x188] sm:$0xff] }
  0xd8   :  { %561 = vmatprep.subr.bf16.mxu0 %v3855_v43  ;;  %v669_v43 = vld [vmem:[#allocation11 + $0x1a8] sm:$0xff] }
  0xd9   :  { %v3386_v47 = vcombine.high %v665_v42, %v669_v43  ;;  %v3385_v53 = vcombine.low %v665_v42, %v669_v43  ;;  %v728_v42 = vld [vmem:[#allocation11 + $0x380] sm:$0xff] }
  0xda   :  { %v732_v43 = vld [vmem:[#allocation11 + $0x3a0] sm:$0xff] }
  0xdb   :  { %562 = vmatpush1.bf16.msra.mxu0 %v3853_v44  ;;  %v3375_v44 = vcombine.low %v656_v32, %v660_v33 }
  0xdc   :  { %563 = vmatprep.subr.bf16.mxu0 %v3861_v45  ;;  %v3377_v45 = vcombine.low %v657_v34, %v661_v35  ;;  %v720_v34 = vld [vmem:[#allocation11 + $0x340] sm:$0xff] }
  0xdd   :  { %v724_v35 = vld [vmem:[#allocation11 + $0x360] sm:$0xff] }
  0xdf   :  { %564 = vmatpush1.bf16.msra.mxu0 %v3859_v46  ;;  %v3384_v46 = vcombine.high %v664_v40, %v668_v41 }
  0xe0   :  { %565 = vmatprep.subr.bf16.mxu0 %v3867_v48  ;;  %v672_v48 = vld [vmem:[#allocation11 + $0x1c0] sm:$0xff] }
  0xe3   :  { %566 = vmatpush1.bf16.msra.mxu0 %v3865_v49  ;;  %v676_v49 = vld [vmem:[#allocation11 + $0x1e0] sm:$0xff] }
  0xe4   :  { %2276 = vmatprep.subr.bf16.mxu0 %v3338_v58  ;;  %v681_v58 = vld [vmem:[#allocation11 + $0x208] sm:$0xff]  ;;  %v3391_v60 = vcombine.low %v672_v48, %v676_v49 }
 0x126   :  { %v292_v59 = vpop.permute.xlu0 %291 }
 0x199   :  { %v280_v61 = vpop.f32.mrb[0].mxu0 }
 0x19a   :  { %v294_v1 = vmul.f32 %v292_v59, %v280_v61  ;;  %v282_v2 = vpop.f32.mrb[1].mxu0  ;;  %v685_v59 = vld [vmem:[#allocation11 + $0x228] sm:$0xff]  ;;  %v3393_v61 = vcombine.low %v673_v50, %v677_v51  ;;  %v736_v50 = vld [vmem:[#allocation11 + $0x3c0] sm:$0xff] }
 0x19b   :  { %287 = vst [vmem:[#allocation18] sm:$0xff] %v282_v2  ;;  %v284_v3 = vpop.f32.mrb[2].mxu0  ;;  %v3402_v63 = vcombine.high %v681_v58, %v685_v59  ;;  %v689_v2 = vld [vmem:[#allocation11 + $0x248] sm:$0xff]  ;;  %v740_v51 = vld [vmem:[#allocation11 + $0x3e0] sm:$0xff] }
 0x19c   :  { %v295_v4 = vpack.c.bf16 %v294_v1, %v294_v1  ;;  %v285_v5 = vpop.f32.mrb[3].mxu0  ;;  %v692_v1 = vld [vmem:[#allocation11 + $0x260] sm:$0xff]  ;;  %v693_v3 = vld [vmem:[#allocation11 + $0x268] sm:$0xff] }
 0x19d   :  { %v3401_v5 = vcombine.low %v681_v58, %v685_v59  ;;  %v4414_v58 = vld [vmem:[#allocation11 + $0x400] sm:$0xff] }
 0x19e   :  { %543 = vmatmul.mubr.bf16.vlgmr.msra.gmra.mrb[0].mxu1 %v295_v4  ;;  %584 = vmatmul.mubr.bf16.vlgmr.msra.gmra.mrb[4].mxu0 %v295_v4  ;;  %v4416_v59 = vld [vmem:[#allocation11 + $0x420] sm:$0xff] }
 0x19f   :  { %2195 = vmatpush1.bf16.msra.mxu1 %v3335_v54  ;;  %2277 = vmatpush1.bf16.msra.mxu0 %v3337_v57  ;;  %v3392_v54 = vcombine.high %v672_v48, %v676_v49  ;;  %v684_v57 = vld [vmem:[#allocation11 + $0x220] sm:$0xff] }
 0x1a0   :  { %2196 = vmatprep.subr.bf16.mxu1 %v3344_v6  ;;  %2278 = vmatprep.subr.bf16.mxu0 %v3346_v7  ;;  %v3400_v62 = vcombine.high %v680_v56, %v684_v57  ;;  %v3399_v4 = vcombine.low %v680_v56, %v684_v57  ;;  %v3408_v6 = vcombine.high %v688_v0, %v692_v1 }
 0x1a1   :  { %v3410_v7 = vcombine.high %v689_v2, %v693_v3 }
 0x1a3   :  { %2197 = vmatpush1.bf16.msra.mxu1 %v3343_v12  ;;  %2279 = vmatpush1.bf16.msra.mxu0 %v3345_v13  ;;  %v3407_v12 = vcombine.low %v688_v0, %v692_v1  ;;  %v3409_v13 = vcombine.low %v689_v2, %v693_v3  ;;  %v330_v2 = vlaneseq }
 0x1a4   :  { %2198 = vmatprep.subr.bf16.mxu1 %v3352_v14  ;;  %2280 = vmatprep.subr.bf16.mxu0 %v3354_v15  ;;  %v3416_v14 = vcombine.high %v696_v8, %v700_v9  ;;  %v3418_v15 = vcombine.high %v697_v10, %v701_v11 }
 0x1a5   :  { %v4426_v3 = vshrl.u32 %v330_v2, 7 }
 0x1a7   :  { %2199 = vmatpush1.bf16.msra.mxu1 %v3351_v20  ;;  %2281 = vmatpush1.bf16.msra.mxu0 %v3353_v21  ;;  %v705_v20 = vld [vmem:[#allocation11 + $0x2c8] sm:$0xff]  ;;  %v3424_v21 = vcombine.high %v704_v18, %v708_v19 }
 0x1a8   :  { %2200 = vmatprep.subr.bf16.mxu1 %v3360_v22  ;;  %2282 = vmatprep.subr.bf16.mxu0 %v3362_v23  ;;  %v709_v22 = vld [vmem:[#allocation11 + $0x2e8] sm:$0xff]  ;;  %v3423_v23 = vcombine.low %v704_v18, %v708_v19 }
 0x1a9   :  { %v3425_v24 = vcombine.low %v705_v20, %v709_v22  ;;  %v3426_v25 = vcombine.high %v705_v20, %v709_v22 }
 0x1ab   :  { %2201 = vmatpush1.bf16.msra.mxu1 %v3359_v28  ;;  %2283 = vmatpush1.bf16.msra.mxu0 %v3361_v29  ;;  %v713_v28 = vld [vmem:[#allocation11 + $0x308] sm:$0xff]  ;;  %v3432_v29 = vcombine.high %v712_v26, %v716_v27 }
 0x1ac   :  { %2202 = vmatprep.subr.bf16.mxu1 %v3368_v30  ;;  %2284 = vmatprep.subr.bf16.mxu0 %v3370_v31  ;;  %v717_v30 = vld [vmem:[#allocation11 + $0x328] sm:$0xff]  ;;  %v3431_v31 = vcombine.low %v712_v26, %v716_v27 }
 0x1ad   :  { %v3433_v32 = vcombine.low %v713_v28, %v717_v30  ;;  %v3434_v33 = vcombine.high %v713_v28, %v717_v30 }
 0x1af   :  { %2203 = vmatpush1.bf16.msra.mxu1 %v3367_v36  ;;  %2285 = vmatpush1.bf16.msra.mxu0 %v3369_v37  ;;  %v721_v36 = vld [vmem:[#allocation11 + $0x348] sm:$0xff]  ;;  %v3440_v37 = vcombine.high %v720_v34, %v724_v35 }
 0x1b0   :  { %2204 = vmatprep.subr.bf16.mxu1 %v3376_v38  ;;  %2286 = vmatprep.subr.bf16.mxu0 %v3378_v39  ;;  %v725_v38 = vld [vmem:[#allocation11 + $0x368] sm:$0xff]  ;;  %v3439_v39 = vcombine.low %v720_v34, %v724_v35  ;;  %v756_v34 = vld [vmem:[#allocation11 + $0x460] sm:$0xff] }
 0x1b1   :  { %v3441_v40 = vcombine.low %v721_v36, %v725_v38  ;;  %v3442_v41 = vcombine.high %v721_v36, %v725_v38  ;;  %v753_v35 = vld [vmem:[#allocation11 + $0x448] sm:$0xff] }
 0x1b2   :  { %v757_v36 = vld [vmem:[#allocation11 + $0x468] sm:$0xff] }
 0x1b3   :  { %2205 = vmatpush1.bf16.msra.mxu1 %v3375_v44  ;;  %2287 = vmatpush1.bf16.msra.mxu0 %v3377_v45  ;;  %v729_v44 = vld [vmem:[#allocation11 + $0x388] sm:$0xff]  ;;  %v3448_v45 = vcombine.high %v728_v42, %v732_v43 }
 0x1b4   :  { %2206 = vmatprep.subr.bf16.mxu1 %v3384_v46  ;;  %2288 = vmatprep.subr.bf16.mxu0 %v3386_v47  ;;  %v733_v46 = vld [vmem:[#allocation11 + $0x3a8] sm:$0xff]  ;;  %v3447_v47 = vcombine.low %v728_v42, %v732_v43  ;;  %v3474_v42 = vcombine.high %v753_v35, %v757_v36  ;;  %v764_v43 = vld [vmem:[#allocation11 + $0x4a0] sm:$0xff] }
 0x1b5   :  { %v3449_v48 = vcombine.low %v729_v44, %v733_v46  ;;  %v3450_v49 = vcombine.high %v729_v44, %v733_v46  ;;  %v761_v44 = vld [vmem:[#allocation11 + $0x488] sm:$0xff] }
 0x1b7   :  { %2207 = vmatpush1.bf16.msra.mxu1 %v3383_v52  ;;  %2289 = vmatpush1.bf16.msra.mxu0 %v3385_v53  ;;  %v737_v52 = vld [vmem:[#allocation11 + $0x3c8] sm:$0xff]  ;;  %v3456_v53 = vcombine.high %v736_v50, %v740_v51 }
 0x1b8   :  { %2208 = vmatprep.subr.bf16.mxu1 %v3392_v54  ;;  %2290 = vmatprep.subr.bf16.mxu0 %v3394_v55  ;;  %v741_v54 = vld [vmem:[#allocation11 + $0x3e8] sm:$0xff]  ;;  %v3455_v55 = vcombine.low %v736_v50, %v740_v51  ;;  %v768_v51 = vld [vmem:[#allocation11 + $0x4c0] sm:$0xff] }
 0x1b9   :  { %v3457_v56 = vcombine.low %v737_v52, %v741_v54  ;;  %v3458_v57 = vcombine.high %v737_v52, %v741_v54  ;;  %v772_v52 = vld [vmem:[#allocation11 + $0x4e0] sm:$0xff]  ;;  %v773_v54 = vld [vmem:[#allocation11 + $0x4e8] sm:$0xff] }
 0x1bb   :  { %2209 = vmatpush1.bf16.msra.mxu1 %v3391_v60  ;;  %2291 = vmatpush1.bf16.msra.mxu0 %v3393_v61  ;;  %v4418_v60 = vld [vmem:[#allocation11 + $0x408] sm:$0xff]  ;;  %v3464_v61 = vcombine.high %v4414_v58, %v4416_v59 }
 0x1bc   :  { %2210 = vmatprep.subr.bf16.mxu1 %v3400_v62  ;;  %2292 = vmatprep.subr.bf16.mxu0 %v3402_v63  ;;  %v749_v62 = vld [vmem:[#allocation11 + $0x428] sm:$0xff]  ;;  %v3463_v63 = vcombine.low %v4414_v58, %v4416_v59  ;;  %v776_v59 = vld [vmem:[#allocation11 + $0x500] sm:$0xff] }
 0x1bd   :  { %v3465_v0 = vcombine.low %v4418_v60, %v749_v62  ;;  %v3466_v1 = vcombine.high %v4418_v60, %v749_v62  ;;  %v780_v60 = vld [vmem:[#allocation11 + $0x520] sm:$0xff]  ;;  %v781_v62 = vld [vmem:[#allocation11 + $0x528] sm:$0xff] }
 0x1bf   :  { %2211 = vmatpush1.bf16.msra.mxu1 %v3399_v4  ;;  %2293 = vmatpush1.bf16.msra.mxu0 %v3401_v5  ;;  %v332_v4 = vsub.s32 0, %v4426_v3  ;;  %v4429_v5 = vld [vmem:[#allocation10] sm:$0xf] }
 0x1c0   :  { %2212 = vmatprep.subr.bf16.mxu1 %v3408_v6  ;;  %2294 = vmatprep.subr.bf16.mxu0 %v3410_v7  ;;  %v336_v6 = vsub.s32 1, %v4426_v3  ;;  %v344_v7 = vsub.s32 3, %v4426_v3 }
 0x1c1   :  { %v333_v8 = vrot.slane %v4429_v5, %v332_v4 }
 0x1c2   :  { %v337_v9 = vrot.slane %v4429_v5, %v336_v6  ;;  %v345_v10 = vrot.slane %v4429_v5, %v344_v7 }
 0x1c3   :  { %2213 = vmatpush1.bf16.msra.mxu1 %v3407_v12  ;;  %2295 = vmatpush1.bf16.msra.mxu0 %v3409_v13 }
 0x1c4   :  { %2214 = vmatprep.subr.bf16.mxu1 %v3416_v14  ;;  %2296 = vmatprep.subr.bf16.mxu0 %v3418_v15 }
 0x1c7   :  { %2215 = vmatpush1.bf16.msra.mxu1 %v3415_v16  ;;  %2297 = vmatpush1.bf16.msra.mxu0 %v3417_v17 }
 0x1c8   :  { %2216 = vmatprep.subr.bf16.mxu1 %v3424_v21  ;;  %2298 = vmatprep.subr.bf16.mxu0 %v3426_v25 }
 0x1cb   :  { %2217 = vmatpush1.bf16.msra.mxu1 %v3423_v23  ;;  %2299 = vmatpush1.bf16.msra.mxu0 %v3425_v24 }
 0x1cc   :  { %2218 = vmatprep.subr.bf16.mxu1 %v3432_v29  ;;  %2300 = vmatprep.subr.bf16.mxu0 %v3434_v33 }
 0x1cf   :  { %2219 = vmatpush1.bf16.msra.mxu1 %v3431_v31  ;;  %2301 = vmatpush1.bf16.msra.mxu0 %v3433_v32  ;;  %v752_v32 = vld [vmem:[#allocation11 + $0x440] sm:$0xff] }
 0x1d0   :  { %2220 = vmatprep.subr.bf16.mxu1 %v3440_v37  ;;  %2302 = vmatprep.subr.bf16.mxu0 %v3442_v41  ;;  %v3472_v41 = vcombine.high %v752_v32, %v756_v34 }
 0x1d3   :  { %2221 = vmatpush1.bf16.msra.mxu1 %v3439_v39  ;;  %2303 = vmatpush1.bf16.msra.mxu0 %v3441_v40  ;;  %v760_v40 = vld [vmem:[#allocation11 + $0x480] sm:$0xff] }
 0x1d4   :  { %2222 = vmatprep.subr.bf16.mxu1 %v3448_v45  ;;  %2304 = vmatprep.subr.bf16.mxu0 %v3450_v49  ;;  %v765_v45 = vld [vmem:[#allocation11 + $0x4a8] sm:$0xff]  ;;  %v3480_v49 = vcombine.high %v760_v40, %v764_v43 }
 0x1d5   :  { %v3482_v50 = vcombine.high %v761_v44, %v765_v45 }
 0x1d7   :  { %2223 = vmatpush1.bf16.msra.mxu1 %v3447_v47  ;;  %2305 = vmatpush1.bf16.msra.mxu0 %v3449_v48  ;;  %v3471_v47 = vcombine.low %v752_v32, %v756_v34  ;;  %v3473_v48 = vcombine.low %v753_v35, %v757_v36  ;;  %v812_v34 = vld [vmem:[#allocation11 + $0x620] sm:$0xff]  ;;  %v809_v35 = vld [vmem:[#allocation11 + $0x608] sm:$0xff] }
 0x1d8   :  { %2224 = vmatprep.subr.bf16.mxu1 %v3456_v53  ;;  %2306 = vmatprep.subr.bf16.mxu0 %v3458_v57  ;;  %v769_v53 = vld [vmem:[#allocation11 + $0x4c8] sm:$0xff]  ;;  %v3488_v57 = vcombine.high %v768_v51, %v772_v52 }
 0x1d9   :  { %v3490_v58 = vcombine.high %v769_v53, %v773_v54  ;;  %v813_v36 = vld [vmem:[#allocation11 + $0x628] sm:$0xff] }
 0x1db   :  { %2225 = vmatpush1.bf16.msra.mxu1 %v3455_v55  ;;  %2307 = vmatpush1.bf16.msra.mxu0 %v3457_v56  ;;  %v3479_v55 = vcombine.low %v760_v40, %v764_v43  ;;  %v3481_v56 = vcombine.low %v761_v44, %v765_v45  ;;  %v3530_v43 = vcombine.high %v809_v35, %v813_v36  ;;  %v816_v44 = vld [vmem:[#allocation11 + $0x640] sm:$0xff] }
 0x1dc   :  { %2235 = vmatprep.subr.bf16.mxu1 %v3464_v61  ;;  %2317 = vmatprep.subr.bf16.mxu0 %v3466_v1  ;;  %v777_v61 = vld [vmem:[#allocation11 + $0x508] sm:$0xff]  ;;  %v3496_v1 = vcombine.high %v776_v59, %v780_v60  ;;  %v820_v45 = vld [vmem:[#allocation11 + $0x660] sm:$0xff] }
 0x1dd   :  { %v3498_v2 = vcombine.high %v777_v61, %v781_v62 }
 0x271   :  { %v544_v11 = vpop.f32.mrb[0].mxu1  ;;  %v4442_v12 = vpop.f32.mrb[4].mxu0 }
 0x272   :  { %v545_v13 = vadd.f32 %v544_v11, %v333_v8  ;;  %v546_v14 = vpop.f32.mrb[1].mxu1  ;;  %v587_v15 = vpop.f32.mrb[5].mxu0  ;;  %v784_v8 = vld [vmem:[#allocation11 + $0x540] sm:$0xff]  ;;  %v789_v11 = vld [vmem:[#allocation11 + $0x568] sm:$0xff] }
 0x273   :  { %v547_v16 = vadd.f32 %v546_v14, %v337_v9  ;;  %v588_v17 = vadd.f32 %v587_v15, %v345_v10  ;;  %v548_v18 = vpop.f32.mrb[2].mxu1  ;;  %v589_v19 = vpop.f32.mrb[6].mxu0  ;;  %v788_v9 = vld [vmem:[#allocation11 + $0x560] sm:$0xff]  ;;  %v785_v10 = vld [vmem:[#allocation11 + $0x548] sm:$0xff]  ;;  %v3497_v14 = vcombine.low %v777_v61, %v781_v62 }
 0x274   :  { %v596_v20 = vmul.f32 1.442695, %v545_v13  ;;  %v549_v23 = vpop.f32.mrb[3].mxu1  ;;  %v590_v24 = vpop.f32.mrb[7].mxu0  ;;  %vm592_vm0 = vcmp.gt.f32.partialorder %v545_v13, 0.0  ;;  %v3504_v15 = vcombine.high %v784_v8, %v788_v9  ;;  %v796_v18 = vld [vmem:[#allocation11 + $0x5a0] sm:$0xff] }
 0x275   :  { %v598_v21 = vmul.f32 1.442695, %v547_v16  ;;  %v602_v22 = vmul.f32 1.442695, %v588_v17  ;;  %vm593_vm1 = vcmp.gt.f32.partialorder %v547_v16, 0.0  ;;  %vm595_vm2 = vcmp.gt.f32.partialorder %v588_v17, 0.0 }
 0x276   :  { %3933 = vpow2.f32 %v596_v20  ;;  %v793_v19 = vld [vmem:[#allocation11 + $0x588] sm:$0xff] }
 0x277   :  { %3935 = vpow2.f32 %v598_v21  ;;  %v797_v20 = vld [vmem:[#allocation11 + $0x5a8] sm:$0xff]  ;;  %v3503_v21 = vcombine.low %v784_v8, %v788_v9 }
 0x278   :  { %3937 = vpow2.f32 %v602_v22  ;;  %v3505_v22 = vcombine.low %v785_v10, %v789_v11  ;;  %v3514_v24 = vcombine.high %v793_v19, %v797_v20 }
 0x280   :  { %v3934_v25 = vpop.eup %3933 }
 0x281   :  { %v3331_v26 = vadd.f32 -1.0, %v3934_v25  ;;  %v3936_v27 = vpop.eup %3935  ;;  %v800_v25 = vld [vmem:[#allocation11 + $0x5c0] sm:$0xff] }
 0x282   :  { %v3938_v28 = vpop.eup %3937  ;;  %v3332_v29 = vadd.f32 -1.0, %v3936_v27  ;;  %v801_v27 = vld [vmem:[#allocation11 + $0x5c8] sm:$0xff] }
 0x283   :  { %v608_v30 = vsel %vm592_vm0, %v545_v13, %v3331_v26  ;;  %v3334_v31 = vadd.f32 -1.0, %v3938_v28  ;;  %v3495_v13 = vcombine.low %v776_v59, %v780_v60  ;;  %v804_v26 = vld [vmem:[#allocation11 + $0x5e0] sm:$0xff]  ;;  %v805_v28 = vld [vmem:[#allocation11 + $0x5e8] sm:$0xff] }
 0x284   :  { %v609_v33 = vsel %vm593_vm1, %v547_v16, %v3332_v29  ;;  %v4446_v39 = vpack.c.bf16 %v608_v30, %v608_v30  ;;  %v3506_v16 = vcombine.high %v785_v10, %v789_v11  ;;  %v3513_v30 = vcombine.low %v793_v19, %v797_v20  ;;  %v848_v20 = vld [vmem:[#allocation11 + $0x740] sm:$0xff] }
 0x285   :  { %v4444_v37 = vpack.c.bf16 %v609_v33, %v609_v33  ;;  %v611_v38 = vsel %vm595_vm2, %v588_v17, %v3334_v31  ;;  %v792_v17 = vld [vmem:[#allocation11 + $0x580] sm:$0xff]  ;;  %v3520_v31 = vcombine.high %v800_v25, %v804_v26  ;;  %v3522_v32 = vcombine.high %v801_v27, %v805_v28 }
 0x286   :  { %v4450_v46 = vpack.c.bf16 %v611_v38, %v611_v38  ;;  %v3512_v23 = vcombine.high %v792_v17, %v796_v18  ;;  %v3511_v29 = vcombine.low %v792_v17, %v796_v18  ;;  %v808_v33 = vld [vmem:[#allocation11 + $0x600] sm:$0xff]  ;;  %v3519_v38 = vcombine.low %v800_v25, %v804_v26 }
 0x287   :  { %2226 = vmatprep.mubr.bf16.mxu1 %v4444_v37  ;;  %2308 = vmatprep.mubr.bf16.mxu0 %v4444_v37  ;;  %v3521_v40 = vcombine.low %v801_v27, %v805_v28  ;;  %v856_v28 = vld [vmem:[#allocation11 + $0x780] sm:$0xff] }
 0x288   :  { %2227 = vmatmul.mubr.bf16.vlgmr.msra.gmra.mrb[4].mxu1 %v4446_v39  ;;  %2309 = vmatmul.mubr.bf16.vlgmr.msra.gmra.mrb[8].mxu0 %v4446_v39 }
 0x289   :  { %2236 = vmatpush1.bf16.msra.mxu1 %v3463_v63  ;;  %2318 = vmatpush1.bf16.msra.mxu0 %v3465_v0  ;;  %v3487_v63 = vcombine.low %v768_v51, %v772_v52  ;;  %v3489_v0 = vcombine.low %v769_v53, %v773_v54  ;;  %v3536_v52 = vcombine.high %v816_v44, %v820_v45  ;;  %v824_v54 = vld [vmem:[#allocation11 + $0x680] sm:$0xff] }
 0x28a   :  { %2267 = vmatprep.mubr.bf16.mxu1 %v4450_v46  ;;  %2349 = vmatprep.mubr.bf16.mxu0 %v4450_v46 }
 0x28b   :  { %2237 = vmatprep.subr.bf16.mxu1 %v3472_v41  ;;  %2319 = vmatprep.subr.bf16.mxu0 %v3474_v42  ;;  %v340_v41 = vsub.s32 2, %v4426_v3  ;;  %v3528_v42 = vcombine.high %v808_v33, %v812_v34 }
 0x28d   :  { %2238 = vmatpush1.bf16.msra.mxu1 %v3471_v47  ;;  %2320 = vmatpush1.bf16.msra.mxu0 %v3473_v48  ;;  %v817_v47 = vld [vmem:[#allocation11 + $0x648] sm:$0xff]  ;;  %v341_v51 = vrot.slane %v4429_v5, %v340_v41  ;;  %v832_v5 = vld [vmem:[#allocation11 + $0x6c0] sm:$0xff] }
 0x28e   :  { %2239 = vmatprep.subr.bf16.mxu1 %v3480_v49  ;;  %2321 = vmatprep.subr.bf16.mxu0 %v3482_v50  ;;  %v821_v48 = vld [vmem:[#allocation11 + $0x668] sm:$0xff]  ;;  %v3527_v49 = vcombine.low %v808_v33, %v812_v34  ;;  %v3529_v50 = vcombine.low %v809_v35, %v813_v36  ;;  %v864_v36 = vld [vmem:[#allocation11 + $0x7c0] sm:$0xff] }
 0x28f   :  { %v3538_v53 = vcombine.high %v817_v47, %v821_v48  ;;  %v3537_v59 = vcombine.low %v817_v47, %v821_v48  ;;  %v4461_v60 = vadd.f32 %v4442_v12, %v341_v51  ;;  %v840_v12 = vld [vmem:[#allocation11 + $0x700] sm:$0xff]  ;;  %v622_v51 = vld [vmem:[#allocation11 + $0x30] sm:$0xff] }
 0x291   :  { %2240 = vmatpush1.bf16.msra.mxu1 %v3479_v55  ;;  %2322 = vmatpush1.bf16.msra.mxu0 %v3481_v56  ;;  %v828_v55 = vld [vmem:[#allocation11 + $0x6a0] sm:$0xff]  ;;  %v825_v56 = vld [vmem:[#allocation11 + $0x688] sm:$0xff]  ;;  %v600_v9 = vmul.f32 1.442695, %v4461_v60  ;;  %vm594_vm3 = vcmp.gt.f32.partialorder %v4461_v60, 0.0 }
 0x292   :  { %2241 = vmatprep.subr.bf16.mxu1 %v3488_v57  ;;  %2323 = vmatprep.subr.bf16.mxu0 %v3490_v58  ;;  %v829_v57 = vld [vmem:[#allocation11 + $0x6a8] sm:$0xff]  ;;  %v3535_v58 = vcombine.low %v816_v44, %v820_v45  ;;  %v3544_v61 = vcombine.high %v824_v54, %v828_v55 }
 0x293   :  { %v3546_v62 = vcombine.high %v825_v56, %v829_v57  ;;  %v3545_v8 = vcombine.low %v825_v56, %v829_v57  ;;  %3939 = vpow2.f32 %v600_v9  ;;  %v634_v9 = vld [vmem:[#allocation11 + $0x90] sm:$0xff] }
 0x295   :  { %2242 = vmatpush1.bf16.msra.mxu1 %v3487_v63  ;;  %2324 = vmatpush1.bf16.msra.mxu0 %v3489_v0  ;;  %v836_v63 = vld [vmem:[#allocation11 + $0x6e0] sm:$0xff]  ;;  %v833_v0 = vld [vmem:[#allocation11 + $0x6c8] sm:$0xff] }
 0x296   :  { %2243 = vmatprep.subr.bf16.mxu1 %v3496_v1  ;;  %2325 = vmatprep.subr.bf16.mxu0 %v3498_v2  ;;  %v837_v1 = vld [vmem:[#allocation11 + $0x6e8] sm:$0xff]  ;;  %v3543_v2 = vcombine.low %v824_v54, %v828_v55  ;;  %v3552_v10 = vcombine.high %v832_v5, %v836_v63 }
 0x297   :  { %v3554_v11 = vcombine.high %v833_v0, %v837_v1  ;;  %v3553_v17 = vcombine.low %v833_v0, %v837_v1 }
 0x299   :  { %2244 = vmatpush1.bf16.msra.mxu1 %v3495_v13  ;;  %2326 = vmatpush1.bf16.msra.mxu0 %v3497_v14  ;;  %v844_v13 = vld [vmem:[#allocation11 + $0x720] sm:$0xff]  ;;  %v841_v14 = vld [vmem:[#allocation11 + $0x708] sm:$0xff] }
 0x29a   :  { %2245 = vmatprep.subr.bf16.mxu1 %v3504_v15  ;;  %2327 = vmatprep.subr.bf16.mxu0 %v3506_v16  ;;  %v845_v15 = vld [vmem:[#allocation11 + $0x728] sm:$0xff]  ;;  %v3551_v16 = vcombine.low %v832_v5, %v836_v63  ;;  %v3560_v18 = vcombine.high %v840_v12, %v844_v13  ;;  %v631_v5 = vld [vmem:[#allocation11 + $0x78] sm:$0xff] }
 0x29b   :  { %v3562_v19 = vcombine.high %v841_v14, %v845_v15  ;;  %v3561_v25 = vcombine.low %v841_v14, %v845_v15 }
 0x29d   :  { %2246 = vmatpush1.bf16.msra.mxu1 %v3503_v21  ;;  %2328 = vmatpush1.bf16.msra.mxu0 %v3505_v22  ;;  %v852_v21 = vld [vmem:[#allocation11 + $0x760] sm:$0xff]  ;;  %v849_v22 = vld [vmem:[#allocation11 + $0x748] sm:$0xff] }
 0x29e   :  { %2247 = vmatprep.subr.bf16.mxu1 %v3512_v23  ;;  %2329 = vmatprep.subr.bf16.mxu0 %v3514_v24  ;;  %v853_v23 = vld [vmem:[#allocation11 + $0x768] sm:$0xff]  ;;  %v3559_v24 = vcombine.low %v840_v12, %v844_v13  ;;  %v3568_v26 = vcombine.high %v848_v20, %v852_v21 }
 0x29f   :  { %v3570_v27 = vcombine.high %v849_v22, %v853_v23  ;;  %v3569_v33 = vcombine.low %v849_v22, %v853_v23 }
 0x2a1   :  { %2248 = vmatpush1.bf16.msra.mxu1 %v3511_v29  ;;  %2330 = vmatpush1.bf16.msra.mxu0 %v3513_v30  ;;  %v860_v29 = vld [vmem:[#allocation11 + $0x7a0] sm:$0xff]  ;;  %v857_v30 = vld [vmem:[#allocation11 + $0x788] sm:$0xff] }
 0x2a2   :  { %2249 = vmatprep.subr.bf16.mxu1 %v3520_v31  ;;  %2331 = vmatprep.subr.bf16.mxu0 %v3522_v32  ;;  %v861_v31 = vld [vmem:[#allocation11 + $0x7a8] sm:$0xff]  ;;  %v3567_v32 = vcombine.low %v848_v20, %v852_v21  ;;  %v3576_v34 = vcombine.high %v856_v28, %v860_v29  ;;  %v3575_v44 = vcombine.low %v856_v28, %v860_v29 }
 0x2a3   :  { %v3578_v35 = vcombine.high %v857_v30, %v861_v31  ;;  %v3577_v45 = vcombine.low %v857_v30, %v861_v31  ;;  %v658_v31 = vld [vmem:[#allocation11 + $0x150] sm:$0xff] }
 0x2a5   :  { %2250 = vmatpush1.bf16.msra.mxu1 %v3519_v38  ;;  %2332 = vmatpush1.bf16.msra.mxu0 %v3521_v40  ;;  %v868_v38 = vld [vmem:[#allocation11 + $0x7e0] sm:$0xff]  ;;  %v865_v40 = vld [vmem:[#allocation11 + $0x7c8] sm:$0xff] }
 0x2a6   :  { %2251 = vmatprep.subr.bf16.mxu1 %v3528_v42  ;;  %2333 = vmatprep.subr.bf16.mxu0 %v3530_v43  ;;  %v869_v42 = vld [vmem:[#allocation11 + $0x7e8] sm:$0xff]  ;;  %v3940_v43 = vpop.eup %3939  ;;  %v3584_v47 = vcombine.high %v864_v36, %v868_v38  ;;  %v3583_v54 = vcombine.low %v864_v36, %v868_v38 }
 0x2a7   :  { %v3586_v48 = vcombine.high %v865_v40, %v869_v42  ;;  %v3585_v55 = vcombine.low %v865_v40, %v869_v42  ;;  %v666_v42 = vld [vmem:[#allocation11 + $0x190] sm:$0xff] }
 0x2a9   :  { %2252 = vmatpush1.bf16.msra.mxu1 %v3527_v49  ;;  %2334 = vmatpush1.bf16.msra.mxu0 %v3529_v50  ;;  %v618_v49 = vld [vmem:[#allocation11 + $0x10] sm:$0xff]  ;;  %v3333_v50 = vadd.f32 -1.0, %v3940_v43 }
 0x2aa   :  { %2253 = vmatprep.subr.bf16.mxu1 %v3536_v52  ;;  %2335 = vmatprep.subr.bf16.mxu0 %v3538_v53  ;;  %v619_v52 = vld [vmem:[#allocation11 + $0x18] sm:$0xff]  ;;  %v3340_v56 = vcombine.high %v618_v49, %v622_v51  ;;  %v3339_v63 = vcombine.low %v618_v49, %v622_v51  ;;  %v670_v43 = vld [vmem:[#allocation11 + $0x1b0] sm:$0xff] }
 0x2ab   :  { %v623_v53 = vld [vmem:[#allocation11 + $0x38] sm:$0xff]  ;;  %v3388_v49 = vcombine.high %v666_v42, %v670_v43  ;;  %v674_v51 = vld [vmem:[#allocation11 + $0x1d0] sm:$0xff] }
 0x2ac   :  { %v3342_v57 = vcombine.high %v619_v52, %v623_v53  ;;  %v3341_v1 = vcombine.low %v619_v52, %v623_v53  ;;  %v678_v52 = vld [vmem:[#allocation11 + $0x1f0] sm:$0xff]  ;;  %v675_v53 = vld [vmem:[#allocation11 + $0x1d8] sm:$0xff] }
 0x2ad   :  { %2254 = vmatpush1.bf16.msra.mxu1 %v3535_v58  ;;  %2336 = vmatpush1.bf16.msra.mxu0 %v3537_v59  ;;  %v610_v58 = vsel %vm594_vm3, %v4461_v60, %v3333_v50  ;;  %v626_v59 = vld [vmem:[#allocation11 + $0x50] sm:$0xff]  ;;  %v635_v60 = vld [vmem:[#allocation11 + $0x98] sm:$0xff] }
 0x2ae   :  { %2255 = vmatprep.subr.bf16.mxu1 %v3544_v61  ;;  %2337 = vmatprep.subr.bf16.mxu0 %v3546_v62  ;;  %v630_v61 = vld [vmem:[#allocation11 + $0x70] sm:$0xff]  ;;  %v627_v62 = vld [vmem:[#allocation11 + $0x58] sm:$0xff]  ;;  %v4466_v0 = vpack.c.bf16 %v610_v58, %v610_v58 }
 0x2af   :  { %v3347_v12 = vcombine.low %v626_v59, %v630_v61  ;;  %v3349_v13 = vcombine.low %v627_v62, %v631_v5 }
 0x2b1   :  { %2256 = vmatpush1.bf16.msra.mxu1 %v3543_v2  ;;  %2338 = vmatpush1.bf16.msra.mxu0 %v3545_v8  ;;  %v3348_v2 = vcombine.high %v626_v59, %v630_v61  ;;  %v3350_v8 = vcombine.high %v627_v62, %v631_v5  ;;  %v682_v59 = vld [vmem:[#allocation11 + $0x210] sm:$0xff]  ;;  %v683_v62 = vld [vmem:[#allocation11 + $0x218] sm:$0xff] }
 0x2b2   :  { %2257 = vmatprep.subr.bf16.mxu1 %v3552_v10  ;;  %2339 = vmatprep.subr.bf16.mxu0 %v3554_v11  ;;  %v638_v10 = vld [vmem:[#allocation11 + $0xb0] sm:$0xff]  ;;  %v639_v11 = vld [vmem:[#allocation11 + $0xb8] sm:$0xff] }
 0x2b3   :  { %v3356_v14 = vcombine.high %v634_v9, %v638_v10  ;;  %v3358_v15 = vcombine.high %v635_v60, %v639_v11  ;;  %v3355_v20 = vcombine.low %v634_v9, %v638_v10  ;;  %v3357_v21 = vcombine.low %v635_v60, %v639_v11  ;;  %v686_v61 = vld [vmem:[#allocation11 + $0x230] sm:$0xff]  ;;  %v687_v5 = vld [vmem:[#allocation11 + $0x238] sm:$0xff] }
 0x2b4   :  { %v690_v9 = vld [vmem:[#allocation11 + $0x250] sm:$0xff]  ;;  %v691_v60 = vld [vmem:[#allocation11 + $0x258] sm:$0xff] }
 0x2b5   :  { %2258 = vmatpush1.bf16.msra.mxu1 %v3551_v16  ;;  %2340 = vmatpush1.bf16.msra.mxu0 %v3553_v17  ;;  %v642_v16 = vld [vmem:[#allocation11 + $0xd0] sm:$0xff]  ;;  %v695_v11 = vld [vmem:[#allocation11 + $0x278] sm:$0xff] }
 0x2b6   :  { %2259 = vmatprep.subr.bf16.mxu1 %v3560_v18  ;;  %2341 = vmatprep.subr.bf16.mxu0 %v3562_v19  ;;  %v646_v17 = vld [vmem:[#allocation11 + $0xf0] sm:$0xff]  ;;  %v643_v18 = vld [vmem:[#allocation11 + $0xd8] sm:$0xff] }
 0x2b7   :  { %v647_v19 = vld [vmem:[#allocation11 + $0xf8] sm:$0xff]  ;;  %v3364_v22 = vcombine.high %v642_v16, %v646_v17  ;;  %v694_v10 = vld [vmem:[#allocation11 + $0x270] sm:$0xff] }
 0x2b8   :  { %v3366_v23 = vcombine.high %v643_v18, %v647_v19  ;;  %v3365_v28 = vcombine.low %v643_v18, %v647_v19  ;;  %v699_v18 = vld [vmem:[#allocation11 + $0x298] sm:$0xff] }
 0x2b9   :  { %2260 = vmatpush1.bf16.msra.mxu1 %v3559_v24  ;;  %2342 = vmatpush1.bf16.msra.mxu0 %v3561_v25  ;;  %v650_v24 = vld [vmem:[#allocation11 + $0x110] sm:$0xff]  ;;  %v703_v19 = vld [vmem:[#allocation11 + $0x2b8] sm:$0xff] }
 0x2ba   :  { %2261 = vmatprep.subr.bf16.mxu1 %v3568_v26  ;;  %2343 = vmatprep.subr.bf16.mxu0 %v3570_v27  ;;  %v654_v25 = vld [vmem:[#allocation11 + $0x130] sm:$0xff]  ;;  %v655_v26 = vld [vmem:[#allocation11 + $0x138] sm:$0xff]  ;;  %v3363_v27 = vcombine.low %v642_v16, %v646_v17 }
 0x2bb   :  { %v3372_v29 = vcombine.high %v650_v24, %v654_v25  ;;  %v698_v16 = vld [vmem:[#allocation11 + $0x290] sm:$0xff] }
 0x2bc   :  { %v702_v17 = vld [vmem:[#allocation11 + $0x2b0] sm:$0xff] }
 0x2bd   :  { %2262 = vmatpush1.bf16.msra.mxu1 %v3567_v32  ;;  %2344 = vmatpush1.bf16.msra.mxu0 %v3569_v33  ;;  %v662_v32 = vld [vmem:[#allocation11 + $0x170] sm:$0xff]  ;;  %v659_v33 = vld [vmem:[#allocation11 + $0x158] sm:$0xff] }
 0x2be   :  { %2263 = vmatprep.subr.bf16.mxu1 %v3576_v34  ;;  %2345 = vmatprep.subr.bf16.mxu0 %v3578_v35  ;;  %v663_v34 = vld [vmem:[#allocation11 + $0x178] sm:$0xff]  ;;  %v3371_v35 = vcombine.low %v650_v24, %v654_v25  ;;  %v3380_v38 = vcombine.high %v658_v31, %v662_v32  ;;  %v706_v24 = vld [vmem:[#allocation11 + $0x2d0] sm:$0xff] }
 0x2bf   :  { %v3382_v40 = vcombine.high %v659_v33, %v663_v34  ;;  %v710_v25 = vld [vmem:[#allocation11 + $0x2f0] sm:$0xff] }
 0x2c1   :  { %2264 = vmatpush1.bf16.msra.mxu1 %v3575_v44  ;;  %2346 = vmatpush1.bf16.msra.mxu0 %v3577_v45  ;;  %v667_v44 = vld [vmem:[#allocation11 + $0x198] sm:$0xff] }
 0x2c2   :  { %2265 = vmatprep.subr.bf16.mxu1 %v3584_v47  ;;  %2347 = vmatprep.subr.bf16.mxu0 %v3586_v48  ;;  %v671_v45 = vld [vmem:[#allocation11 + $0x1b8] sm:$0xff]  ;;  %v3379_v47 = vcombine.low %v658_v31, %v662_v32  ;;  %v3381_v48 = vcombine.low %v659_v33, %v663_v34  ;;  %v714_v31 = vld [vmem:[#allocation11 + $0x310] sm:$0xff] }
 0x2c3   :  { %v3390_v50 = vcombine.high %v667_v44, %v671_v45  ;;  %v718_v32 = vld [vmem:[#allocation11 + $0x330] sm:$0xff]  ;;  %v715_v33 = vld [vmem:[#allocation11 + $0x318] sm:$0xff] }
 0x2c4   :  { %v719_v34 = vld [vmem:[#allocation11 + $0x338] sm:$0xff] }
 0x2c5   :  { %2266 = vmatpush1.bf16.msra.mxu1 %v3583_v54  ;;  %2348 = vmatpush1.bf16.msra.mxu0 %v3585_v55  ;;  %v679_v54 = vld [vmem:[#allocation11 + $0x1f8] sm:$0xff]  ;;  %v3387_v55 = vcombine.low %v666_v42, %v670_v43  ;;  %v722_v42 = vld [vmem:[#allocation11 + $0x350] sm:$0xff] }
 0x2c6   :  { %2358 = vmatprep.subr.bf16.mxu1 %v3340_v56  ;;  %2440 = vmatprep.subr.bf16.mxu0 %v3342_v57  ;;  %v3389_v56 = vcombine.low %v667_v44, %v671_v45  ;;  %v3396_v57 = vcombine.high %v674_v51, %v678_v52  ;;  %v3398_v58 = vcombine.high %v675_v53, %v679_v54  ;;  %v726_v43 = vld [vmem:[#allocation11 + $0x370] sm:$0xff]  ;;  %v723_v44 = vld [vmem:[#allocation11 + $0x358] sm:$0xff] }
 0x2c7   :  { %v727_v45 = vld [vmem:[#allocation11 + $0x378] sm:$0xff] }
 0x2c8   :  { %2268 = vmatmul.mubr.bf16.vlgmr.msra.gmra.mrb[4].mxu1 %v4466_v0  ;;  %2350 = vmatmul.mubr.bf16.vlgmr.msra.gmra.mrb[8].mxu0 %v4466_v0 }
 0x2c9   :  { %2359 = vmatpush1.bf16.msra.mxu1 %v3339_v63  ;;  %2390 = vmatprep.mubr.bf16.mxu1 %v4444_v37  ;;  %v3395_v63 = vcombine.low %v674_v51, %v678_v52  ;;  %v730_v51 = vld [vmem:[#allocation11 + $0x390] sm:$0xff] }
 0x2ca   :  { %2441 = vmatpush1.bf16.msra.mxu0 %v3341_v1  ;;  %2472 = vmatprep.mubr.bf16.mxu0 %v4444_v37  ;;  %v651_v37 = vld [vmem:[#allocation11 + $0x118] sm:$0xff]  ;;  %v3397_v1 = vcombine.low %v675_v53, %v679_v54  ;;  %v734_v52 = vld [vmem:[#allocation11 + $0x3b0] sm:$0xff] }
 0x2cb   :  { %2360 = vmatprep.subr.bf16.mxu1 %v3348_v2  ;;  %2442 = vmatprep.subr.bf16.mxu0 %v3350_v8  ;;  %v3374_v30 = vcombine.high %v651_v37, %v655_v26  ;;  %v3373_v36 = vcombine.low %v651_v37, %v655_v26  ;;  %v3404_v2 = vcombine.high %v682_v59, %v686_v61  ;;  %v707_v37 = vld [vmem:[#allocation11 + $0x2d8] sm:$0xff] }
 0x2cc   :  { %v3406_v8 = vcombine.high %v683_v62, %v687_v5  ;;  %v711_v26 = vld [vmem:[#allocation11 + $0x2f8] sm:$0xff] }
 0x2cd   :  { %2361 = vmatpush1.bf16.msra.mxu1 %v3347_v12  ;;  %v3403_v12 = vcombine.low %v682_v59, %v686_v61  ;;  %v731_v53 = vld [vmem:[#allocation11 + $0x398] sm:$0xff]  ;;  %v738_v59 = vld [vmem:[#allocation11 + $0x3d0] sm:$0xff] }
 0x2ce   :  { %2443 = vmatpush1.bf16.msra.mxu0 %v3349_v13  ;;  %2362 = vmatprep.subr.bf16.mxu1 %v3356_v14  ;;  %v3405_v13 = vcombine.low %v683_v62, %v687_v5  ;;  %v3412_v14 = vcombine.high %v690_v9, %v694_v10  ;;  %v735_v54 = vld [vmem:[#allocation11 + $0x3b8] sm:$0xff]  ;;  %v742_v61 = vld [vmem:[#allocation11 + $0x3f0] sm:$0xff] }
 0x2cf   :  { %2444 = vmatprep.subr.bf16.mxu0 %v3358_v15  ;;  %v3414_v15 = vcombine.high %v691_v60, %v695_v11  ;;  %v739_v62 = vld [vmem:[#allocation11 + $0x3d8] sm:$0xff] }
 0x2d0   :  { %v743_v5 = vld [vmem:[#allocation11 + $0x3f8] sm:$0xff] }
 0x2d1   :  { %2363 = vmatpush1.bf16.msra.mxu1 %v3355_v20  ;;  %v3411_v20 = vcombine.low %v690_v9, %v694_v10  ;;  %v746_v9 = vld [vmem:[#allocation11 + $0x410] sm:$0xff] }
 0x2d2   :  { %2445 = vmatpush1.bf16.msra.mxu0 %v3357_v21  ;;  %2364 = vmatprep.subr.bf16.mxu1 %v3364_v22  ;;  %v3413_v21 = vcombine.low %v691_v60, %v695_v11  ;;  %v3420_v22 = vcombine.high %v698_v16, %v702_v17  ;;  %v750_v10 = vld [vmem:[#allocation11 + $0x430] sm:$0xff]  ;;  %v747_v60 = vld [vmem:[#allocation11 + $0x418] sm:$0xff] }
 0x2d3   :  { %2446 = vmatprep.subr.bf16.mxu0 %v3366_v23  ;;  %v3422_v23 = vcombine.high %v699_v18, %v703_v19  ;;  %v751_v11 = vld [vmem:[#allocation11 + $0x438] sm:$0xff] }
 0x2d5   :  { %2365 = vmatpush1.bf16.msra.mxu1 %v3363_v27  ;;  %v3419_v27 = vcombine.low %v698_v16, %v702_v17  ;;  %v754_v16 = vld [vmem:[#allocation11 + $0x450] sm:$0xff] }
 0x2d6   :  { %2447 = vmatpush1.bf16.msra.mxu0 %v3365_v28  ;;  %2366 = vmatprep.subr.bf16.mxu1 %v3372_v29  ;;  %v3421_v28 = vcombine.low %v699_v18, %v703_v19  ;;  %v3428_v29 = vcombine.high %v706_v24, %v710_v25  ;;  %v758_v17 = vld [vmem:[#allocation11 + $0x470] sm:$0xff]  ;;  %v3467_v18 = vcombine.low %v746_v9, %v750_v10  ;;  %v755_v19 = vld [vmem:[#allocation11 + $0x458] sm:$0xff] }
 0x2d7   :  { %2448 = vmatprep.subr.bf16.mxu0 %v3374_v30  ;;  %v3430_v30 = vcombine.high %v707_v37, %v711_v26 }
 0x2d9   :  { %2367 = vmatpush1.bf16.msra.mxu1 %v3371_v35  ;;  %v3427_v35 = vcombine.low %v706_v24, %v710_v25  ;;  %v766_v24 = vld [vmem:[#allocation11 + $0x4b0] sm:$0xff] }
 0x2da   :  { %2449 = vmatpush1.bf16.msra.mxu0 %v3373_v36  ;;  %2368 = vmatprep.subr.bf16.mxu1 %v3380_v38  ;;  %v3429_v36 = vcombine.low %v707_v37, %v711_v26  ;;  %v3436_v38 = vcombine.high %v714_v31, %v718_v32  ;;  %v763_v37 = vld [vmem:[#allocation11 + $0x498] sm:$0xff] }
 0x2db   :  { %2450 = vmatprep.subr.bf16.mxu0 %v3382_v40  ;;  %v3438_v40 = vcombine.high %v715_v33, %v719_v34  ;;  %v767_v26 = vld [vmem:[#allocation11 + $0x4b8] sm:$0xff] }
 0x2dd   :  { %2369 = vmatpush1.bf16.msra.mxu1 %v3379_v47  ;;  %v3435_v47 = vcombine.low %v714_v31, %v718_v32  ;;  %v770_v31 = vld [vmem:[#allocation11 + $0x4d0] sm:$0xff] }
 0x2de   :  { %2451 = vmatpush1.bf16.msra.mxu0 %v3381_v48  ;;  %2370 = vmatprep.subr.bf16.mxu1 %v3388_v49  ;;  %v3437_v48 = vcombine.low %v715_v33, %v719_v34  ;;  %v3444_v49 = vcombine.high %v722_v42, %v726_v43  ;;  %v774_v32 = vld [vmem:[#allocation11 + $0x4f0] sm:$0xff]  ;;  %v771_v33 = vld [vmem:[#allocation11 + $0x4d8] sm:$0xff] }
 0x2df   :  { %2452 = vmatprep.subr.bf16.mxu0 %v3390_v50  ;;  %v3446_v50 = vcombine.high %v723_v44, %v727_v45  ;;  %v775_v34 = vld [vmem:[#allocation11 + $0x4f8] sm:$0xff] }
 0x2e1   :  { %2371 = vmatpush1.bf16.msra.mxu1 %v3387_v55  ;;  %v3443_v55 = vcombine.low %v722_v42, %v726_v43  ;;  %v782_v42 = vld [vmem:[#allocation11 + $0x530] sm:$0xff]  ;;  %v779_v43 = vld [vmem:[#allocation11 + $0x518] sm:$0xff] }
 0x2e2   :  { %2453 = vmatpush1.bf16.msra.mxu0 %v3389_v56  ;;  %2372 = vmatprep.subr.bf16.mxu1 %v3396_v57  ;;  %v3445_v56 = vcombine.low %v723_v44, %v727_v45  ;;  %v3452_v57 = vcombine.high %v730_v51, %v734_v52  ;;  %v783_v44 = vld [vmem:[#allocation11 + $0x538] sm:$0xff]  ;;  %v3493_v45 = vcombine.low %v771_v33, %v775_v34 }
 0x2e3   :  { %2454 = vmatprep.subr.bf16.mxu0 %v3398_v58  ;;  %v3454_v58 = vcombine.high %v731_v53, %v735_v54 }
 0x2e5   :  { %2373 = vmatpush1.bf16.msra.mxu1 %v3395_v63  ;;  %v3451_v63 = vcombine.low %v730_v51, %v734_v52  ;;  %v787_v51 = vld [vmem:[#allocation11 + $0x558] sm:$0xff] }
 0x2e6   :  { %2455 = vmatpush1.bf16.msra.mxu0 %v3397_v1  ;;  %2374 = vmatprep.subr.bf16.mxu1 %v3404_v2  ;;  %v3453_v1 = vcombine.low %v731_v53, %v735_v54  ;;  %v3460_v2 = vcombine.high %v738_v59, %v742_v61  ;;  %v791_v52 = vld [vmem:[#allocation11 + $0x578] sm:$0xff]  ;;  %v3501_v54 = vcombine.low %v779_v43, %v783_v44 }
 0x2e7   :  { %2456 = vmatprep.subr.bf16.mxu0 %v3406_v8  ;;  %v3462_v8 = vcombine.high %v739_v62, %v743_v5 }
 0x2e9   :  { %2375 = vmatpush1.bf16.msra.mxu1 %v3403_v12  ;;  %v3459_v12 = vcombine.low %v738_v59, %v742_v61  ;;  %v795_v59 = vld [vmem:[#allocation11 + $0x598] sm:$0xff] }
 0x2ea   :  { %2457 = vmatpush1.bf16.msra.mxu0 %v3405_v13  ;;  %2376 = vmatprep.subr.bf16.mxu1 %v3412_v14  ;;  %v3461_v13 = vcombine.low %v739_v62, %v743_v5  ;;  %v3468_v14 = vcombine.high %v746_v9, %v750_v10  ;;  %v799_v61 = vld [vmem:[#allocation11 + $0x5b8] sm:$0xff]  ;;  %v3509_v5 = vcombine.low %v787_v51, %v791_v52 }
 0x2eb   :  { %2458 = vmatprep.subr.bf16.mxu0 %v3414_v15  ;;  %v3470_v15 = vcombine.high %v747_v60, %v751_v11  ;;  %v803_v9 = vld [vmem:[#allocation11 + $0x5d8] sm:$0xff] }
 0x2ec   :  { %v807_v10 = vld [vmem:[#allocation11 + $0x5f8] sm:$0xff] }
 0x2ed   :  { %2377 = vmatpush1.bf16.msra.mxu1 %v3411_v20  ;;  %v759_v20 = vld [vmem:[#allocation11 + $0x478] sm:$0xff] }
 0x2ee   :  { %2459 = vmatpush1.bf16.msra.mxu0 %v3413_v21  ;;  %2378 = vmatprep.subr.bf16.mxu1 %v3420_v22  ;;  %v3469_v21 = vcombine.low %v747_v60, %v751_v11  ;;  %v3476_v22 = vcombine.high %v754_v16, %v758_v17  ;;  %v3478_v25 = vcombine.high %v755_v19, %v759_v20 }
 0x2ef   :  { %2460 = vmatprep.subr.bf16.mxu0 %v3422_v23  ;;  %v762_v23 = vld [vmem:[#allocation11 + $0x490] sm:$0xff]  ;;  %v3517_v11 = vcombine.low %v795_v59, %v799_v61 }
 0x2f1   :  { %2379 = vmatpush1.bf16.msra.mxu1 %v3419_v27  ;;  %v3475_v27 = vcombine.low %v754_v16, %v758_v17  ;;  %v811_v16 = vld [vmem:[#allocation11 + $0x618] sm:$0xff] }
 0x2f2   :  { %2461 = vmatpush1.bf16.msra.mxu0 %v3421_v28  ;;  %2380 = vmatprep.subr.bf16.mxu1 %v3428_v29  ;;  %v3477_v28 = vcombine.low %v755_v19, %v759_v20  ;;  %v3484_v29 = vcombine.high %v762_v23, %v766_v24  ;;  %v815_v17 = vld [vmem:[#allocation11 + $0x638] sm:$0xff]  ;;  %v3525_v19 = vcombine.low %v803_v9, %v807_v10 }
 0x2f3   :  { %2462 = vmatprep.subr.bf16.mxu0 %v3430_v30  ;;  %v3486_v30 = vcombine.high %v763_v37, %v767_v26 }
 0x2f5   :  { %2381 = vmatpush1.bf16.msra.mxu1 %v3427_v35  ;;  %v3483_v35 = vcombine.low %v762_v23, %v766_v24  ;;  %v822_v23 = vld [vmem:[#allocation11 + $0x670] sm:$0xff]  ;;  %v819_v24 = vld [vmem:[#allocation11 + $0x658] sm:$0xff] }
 0x2f6   :  { %2463 = vmatpush1.bf16.msra.mxu0 %v3429_v36  ;;  %2382 = vmatprep.subr.bf16.mxu1 %v3436_v38  ;;  %v3492_v36 = vcombine.high %v770_v31, %v774_v32  ;;  %v3494_v38 = vcombine.high %v771_v33, %v775_v34 }
 0x2f7   :  { %2464 = vmatprep.subr.bf16.mxu0 %v3438_v40  ;;  %v778_v40 = vld [vmem:[#allocation11 + $0x510] sm:$0xff] }
 0x2f8   :  { %v3499_v53 = vcombine.low %v778_v40, %v782_v42 }
 0x2f9   :  { %2383 = vmatpush1.bf16.msra.mxu1 %v3435_v47  ;;  %v3500_v47 = vcombine.high %v778_v40, %v782_v42  ;;  %v835_v40 = vld [vmem:[#allocation11 + $0x6d8] sm:$0xff] }
 0x2fa   :  { %2465 = vmatpush1.bf16.msra.mxu0 %v3437_v48  ;;  %2384 = vmatprep.subr.bf16.mxu1 %v3444_v49  ;;  %v3502_v48 = vcombine.high %v779_v43, %v783_v44  ;;  %v786_v49 = vld [vmem:[#allocation11 + $0x550] sm:$0xff]  ;;  %v839_v42 = vld [vmem:[#allocation11 + $0x6f8] sm:$0xff] }
 0x2fb   :  { %2466 = vmatprep.subr.bf16.mxu0 %v3446_v50  ;;  %v790_v50 = vld [vmem:[#allocation11 + $0x570] sm:$0xff] }
 0x2fc   :  { %v3507_v62 = vcombine.low %v786_v49, %v790_v50 }
 0x2fd   :  { %2385 = vmatpush1.bf16.msra.mxu1 %v3443_v55  ;;  %v3508_v55 = vcombine.high %v786_v49, %v790_v50  ;;  %v843_v49 = vld [vmem:[#allocation11 + $0x718] sm:$0xff] }
 0x2fe   :  { %2467 = vmatpush1.bf16.msra.mxu0 %v3445_v56  ;;  %2386 = vmatprep.subr.bf16.mxu1 %v3452_v57  ;;  %v3510_v56 = vcombine.high %v787_v51, %v791_v52  ;;  %v794_v57 = vld [vmem:[#allocation11 + $0x590] sm:$0xff]  ;;  %v847_v50 = vld [vmem:[#allocation11 + $0x738] sm:$0xff]  ;;  %v3557_v52 = vcombine.low %v835_v40, %v839_v42 }
 0x2ff   :  { %2468 = vmatprep.subr.bf16.mxu0 %v3454_v58  ;;  %v798_v58 = vld [vmem:[#allocation11 + $0x5b0] sm:$0xff] }
 0x300   :  { %v3515_v60 = vcombine.low %v794_v57, %v798_v58 }
 0x301   :  { %2387 = vmatpush1.bf16.msra.mxu1 %v3451_v63  ;;  %v3516_v63 = vcombine.high %v794_v57, %v798_v58  ;;  %v851_v57 = vld [vmem:[#allocation11 + $0x758] sm:$0xff] }
 0x302   :  { %2469 = vmatpush1.bf16.msra.mxu0 %v3453_v1  ;;  %2388 = vmatprep.subr.bf16.mxu1 %v3460_v2  ;;  %v3518_v1 = vcombine.high %v795_v59, %v799_v61  ;;  %v802_v2 = vld [vmem:[#allocation11 + $0x5d0] sm:$0xff]  ;;  %v855_v58 = vld [vmem:[#allocation11 + $0x778] sm:$0xff]  ;;  %v3565_v61 = vcombine.low %v843_v49, %v847_v50 }
 0x303   :  { %2470 = vmatprep.subr.bf16.mxu0 %v3462_v8  ;;  %v806_v8 = vld [vmem:[#allocation11 + $0x5f0] sm:$0xff] }
 0x305   :  { %2389 = vmatpush1.bf16.msra.mxu1 %v3459_v12  ;;  %v3524_v12 = vcombine.high %v802_v2, %v806_v8 }
 0x306   :  { %2471 = vmatpush1.bf16.msra.mxu0 %v3461_v13  ;;  %2399 = vmatprep.subr.bf16.mxu1 %v3468_v14  ;;  %v3526_v13 = vcombine.high %v803_v9, %v807_v10  ;;  %v810_v14 = vld [vmem:[#allocation11 + $0x610] sm:$0xff]  ;;  %v3573_v10 = vcombine.low %v851_v57, %v855_v58 }
 0x307   :  { %2481 = vmatprep.subr.bf16.mxu0 %v3470_v15  ;;  %v814_v15 = vld [vmem:[#allocation11 + $0x630] sm:$0xff] }
 0x308   :  { %2391 = vmatmul.mubr.bf16.vlgmr.msra.gmra.mrb[8].mxu1 %v4446_v39  ;;  %v3532_v20 = vcombine.high %v810_v14, %v814_v15 }
 0x309   :  { %2473 = vmatmul.mubr.bf16.vlgmr.msra.gmra.mrb[12].mxu0 %v4446_v39  ;;  %2400 = vmatpush1.bf16.msra.mxu1 %v3467_v18  ;;  %v3485_v39 = vcombine.low %v763_v37, %v767_v26  ;;  %v3523_v18 = vcombine.low %v802_v2, %v806_v8  ;;  %v3531_v37 = vcombine.low %v810_v14, %v814_v15  ;;  %v859_v2 = vld [vmem:[#allocation11 + $0x798] sm:$0xff] }
 0x30a   :  { %2431 = vmatprep.mubr.bf16.mxu1 %v4450_v46  ;;  %2482 = vmatpush1.bf16.msra.mxu0 %v3469_v21  ;;  %v3534_v21 = vcombine.high %v811_v16, %v815_v17  ;;  %v3533_v26 = vcombine.low %v811_v16, %v815_v17  ;;  %v863_v8 = vld [vmem:[#allocation11 + $0x7b8] sm:$0xff] }
 0x30b   :  { %2513 = vmatprep.mubr.bf16.mxu0 %v4450_v46  ;;  %2401 = vmatprep.subr.bf16.mxu1 %v3476_v22  ;;  %v3491_v46 = vcombine.low %v770_v31, %v774_v32  ;;  %v818_v22 = vld [vmem:[#allocation11 + $0x650] sm:$0xff]  ;;  %v827_v31 = vld [vmem:[#allocation11 + $0x698] sm:$0xff]  ;;  %v3581_v17 = vcombine.low %v859_v2, %v863_v8 }
 0x30c   :  { %2483 = vmatprep.subr.bf16.mxu0 %v3478_v25  ;;  %v823_v25 = vld [vmem:[#allocation11 + $0x678] sm:$0xff]  ;;  %v3539_v33 = vcombine.low %v818_v22, %v822_v23 }
 0x30d   :  { %2402 = vmatpush1.bf16.msra.mxu1 %v3475_v27  ;;  %v3540_v27 = vcombine.high %v818_v22, %v822_v23  ;;  %v831_v32 = vld [vmem:[#allocation11 + $0x6b8] sm:$0xff]  ;;  %v3541_v34 = vcombine.low %v819_v24, %v823_v25  ;;  %v3869_v22 = vld [vmem:[#allocation14 + $0x40] sm:$0xff]  }
 0x30e   :  { %2484 = vmatpush1.bf16.msra.mxu0 %v3477_v28  ;;  %2403 = vmatprep.subr.bf16.mxu1 %v3484_v29  ;;  %v3542_v28 = vcombine.high %v819_v24, %v823_v25  ;;  %v826_v29 = vld [vmem:[#allocation11 + $0x690] sm:$0xff]  ;;  %v3549_v44 = vcombine.low %v827_v31, %v831_v32  ;;  %v867_v14 = vld [vmem:[#allocation11 + $0x7d8] sm:$0xff]  ;;  %v3870_v23 = vld [vmem:[#allocation14 + $0xc0] sm:$0xff]  }
 0x30f   :  { %2485 = vmatprep.subr.bf16.mxu0 %v3486_v30  ;;  %v830_v30 = vld [vmem:[#allocation11 + $0x6b0] sm:$0xff]  ;;  %v871_v15 = vld [vmem:[#allocation11 + $0x7f8] sm:$0xff]  ;;  %v3871_v24 = vld [vmem:[#allocation14] sm:$0xff]  }
 0x310   :  { %v3547_v43 = vcombine.low %v826_v29, %v830_v30  ;;  %v3872_v25 = vld [vmem:[#allocation14 + $0x80] sm:$0xff]  }
 0x311   :  { %2404 = vmatpush1.bf16.msra.mxu1 %v3483_v35  ;;  %v3548_v35 = vcombine.high %v826_v29, %v830_v30  ;;  %v3877_v29 = vld [vmem:[#allocation14 + $0x50] sm:$0xff]  }
 0x312   :  { %2486 = vmatpush1.bf16.msra.mxu0 %v3485_v39  ;;  %2405 = vmatprep.subr.bf16.mxu1 %v3492_v36  ;;  %v3550_v39 = vcombine.high %v827_v31, %v831_v32  ;;  %v834_v36 = vld [vmem:[#allocation11 + $0x6d0] sm:$0xff]  ;;  %v3878_v30 = vld [vmem:[#allocation14 + $0xd0] sm:$0xff]  }
 0x313   :  { %2487 = vmatprep.subr.bf16.mxu0 %v3494_v38  ;;  %v838_v38 = vld [vmem:[#allocation11 + $0x6f0] sm:$0xff]  ;;  %v3879_v31 = vld [vmem:[#allocation14 + $0x10] sm:$0xff]  }
 0x314   :  { %v3555_v51 = vcombine.low %v834_v36, %v838_v38  ;;  %v3880_v32 = vld [vmem:[#allocation14 + $0x90] sm:$0xff]  }
 0x315   :  { %2406 = vmatpush1.bf16.msra.mxu1 %v3491_v46  ;;  %v3556_v46 = vcombine.high %v834_v36, %v838_v38  ;;  %v3886_v36 = vld [vmem:[#allocation14 + $0xe0] sm:$0xff]  }
 0x316   :  { %2488 = vmatpush1.bf16.msra.mxu0 %v3493_v45  ;;  %2407 = vmatprep.subr.bf16.mxu1 %v3500_v47  ;;  %v3558_v45 = vcombine.high %v835_v40, %v839_v42  ;;  %v842_v47 = vld [vmem:[#allocation11 + $0x710] sm:$0xff]  ;;  %v3887_v38 = vld [vmem:[#allocation14 + $0x20] sm:$0xff]  }
 0x317   :  { %2489 = vmatprep.subr.bf16.mxu0 %v3502_v48  ;;  %v846_v48 = vld [vmem:[#allocation11 + $0x730] sm:$0xff]  ;;  %v3888_v40 = vld [vmem:[#allocation14 + $0xa0] sm:$0xff]  }
 0x318   :  { %v3563_v59 = vcombine.low %v842_v47, %v846_v48  ;;  %v3889_v42 = vld [vmem:[#allocation14 + $0x68] sm:$0xff]  }
 0x319   :  { %2408 = vmatpush1.bf16.msra.mxu1 %v3499_v53  ;;  %v3564_v53 = vcombine.high %v842_v47, %v846_v48  ;;  %v3894_v47 = vld [vmem:[#allocation14 + $0xf0] sm:$0xff]  }
 0x31a   :  { %2490 = vmatpush1.bf16.msra.mxu0 %v3501_v54  ;;  %2409 = vmatprep.subr.bf16.mxu1 %v3508_v55  ;;  %v3566_v54 = vcombine.high %v843_v49, %v847_v50  ;;  %v850_v55 = vld [vmem:[#allocation11 + $0x750] sm:$0xff]  ;;  %v3895_v48 = vld [vmem:[#allocation14 + $0x30] sm:$0xff]   ;;  %v3897_v50 = vld [vmem:[#allocation14 + $0x78] sm:$0xff]  }
 0x31b   :  { %2491 = vmatprep.subr.bf16.mxu0 %v3510_v56  ;;  %v854_v56 = vld [vmem:[#allocation11 + $0x770] sm:$0xff]  ;;  %v3896_v49 = vld [vmem:[#allocation14 + $0xb0] sm:$0xff]  }
 0x31c   :  { %v3571_v9 = vcombine.low %v850_v55, %v854_v56 }
 0x31d   :  { %2410 = vmatpush1.bf16.msra.mxu1 %v3507_v62  ;;  %v3572_v62 = vcombine.high %v850_v55, %v854_v56  ;;  %v3902_v55 = vld [vmem:[#allocation14 + $0x1c0] sm:$0xff]   ;;  %v4478_v56 = vld [vmem:[#allocation13] sm:$0xff] }
 0x31e   :  { %2492 = vmatpush1.bf16.msra.mxu0 %v3509_v5  ;;  %2411 = vmatprep.subr.bf16.mxu1 %v3516_v63  ;;  %v3574_v5 = vcombine.high %v851_v57, %v855_v58  ;;  %v858_v63 = vld [vmem:[#allocation11 + $0x790] sm:$0xff]  ;;  %v877_v57 = vrot.slane %v4478_v56, %v332_v4  ;;  %v885_v58 = vrot.slane %v4478_v56, %v340_v41 }
 0x31f   :  { %2493 = vmatprep.subr.bf16.mxu0 %v3518_v1  ;;  %v862_v1 = vld [vmem:[#allocation11 + $0x7b0] sm:$0xff] }
 0x320   :  { %v3579_v16 = vcombine.low %v858_v63, %v862_v1 }
 0x321   :  { %2412 = vmatpush1.bf16.msra.mxu1 %v3515_v60  ;;  %v3580_v60 = vcombine.high %v858_v63, %v862_v1 }
 0x322   :  { %2494 = vmatpush1.bf16.msra.mxu0 %v3517_v11  ;;  %2413 = vmatprep.subr.bf16.mxu1 %v3524_v12  ;;  %v3582_v11 = vcombine.high %v859_v2, %v863_v8  ;;  %v866_v12 = vld [vmem:[#allocation11 + $0x7d0] sm:$0xff] }
 0x323   :  { %2495 = vmatprep.subr.bf16.mxu0 %v3526_v13  ;;  %v870_v13 = vld [vmem:[#allocation11 + $0x7f0] sm:$0xff] }
 0x325   :  { %2414 = vmatpush1.bf16.msra.mxu1 %v3523_v18  ;;  %v3588_v18 = vcombine.high %v866_v12, %v870_v13 }
 0x326   :  { %2496 = vmatpush1.bf16.msra.mxu0 %v3525_v19  ;;  %2415 = vmatprep.subr.bf16.mxu1 %v3532_v20  ;;  %v3590_v19 = vcombine.high %v867_v14, %v871_v15  ;;  %v3587_v20 = vcombine.low %v866_v12, %v870_v13 }
 0x327   :  { %2497 = vmatprep.subr.bf16.mxu0 %v3534_v21  ;;  %v3589_v21 = vcombine.low %v867_v14, %v871_v15 }
 0x329   :  { %2416 = vmatpush1.bf16.msra.mxu1 %v3531_v37  ;;  %v3873_v37 = vld [vmem:[#allocation14 + $0x48] sm:$0xff]  }
 0x32a   :  { %2498 = vmatpush1.bf16.msra.mxu0 %v3533_v26  ;;  %2417 = vmatprep.subr.bf16.mxu1 %v3540_v27  ;;  %v3874_v26 = vld [vmem:[#allocation14 + $0xc8] sm:$0xff]  }
 0x32b   :  { %2499 = vmatprep.subr.bf16.mxu0 %v3542_v28  ;;  %v3875_v27 = vld [vmem:[#allocation14 + $0x8] sm:$0xff]  }
 0x32c   :  { %v3876_v28 = vld [vmem:[#allocation14 + $0x88] sm:$0xff]  }
 0x32d   :  { %2418 = vmatpush1.bf16.msra.mxu1 %v3539_v33  ;;  %v3881_v33 = vld [vmem:[#allocation14 + $0x58] sm:$0xff]  }
 0x32e   :  { %2500 = vmatpush1.bf16.msra.mxu0 %v3541_v34  ;;  %2419 = vmatprep.subr.bf16.mxu1 %v3548_v35  ;;  %v3882_v34 = vld [vmem:[#allocation14 + $0xd8] sm:$0xff]  }
 0x32f   :  { %2501 = vmatprep.subr.bf16.mxu0 %v3550_v39  ;;  %v3883_v35 = vld [vmem:[#allocation14 + $0x18] sm:$0xff]   ;;  %v3885_v39 = vld [vmem:[#allocation14 + $0x60] sm:$0xff]  }
 0x331   :  { %2420 = vmatpush1.bf16.msra.mxu1 %v3547_v43  ;;  %v3890_v43 = vld [vmem:[#allocation14 + $0xe8] sm:$0xff]  }
 0x332   :  { %2502 = vmatpush1.bf16.msra.mxu0 %v3549_v44  ;;  %2421 = vmatprep.subr.bf16.mxu1 %v3556_v46  ;;  %v3891_v44 = vld [vmem:[#allocation14 + $0x28] sm:$0xff]  }
 0x333   :  { %2503 = vmatprep.subr.bf16.mxu0 %v3558_v45  ;;  %v3892_v46 = vld [vmem:[#allocation14 + $0xa8] sm:$0xff]   ;;  %v3893_v45 = vld [vmem:[#allocation14 + $0x70] sm:$0xff]  }
 0x335   :  { %2422 = vmatpush1.bf16.msra.mxu1 %v3555_v51  ;;  %v3898_v51 = vld [vmem:[#allocation14 + $0xf8] sm:$0xff]  }
 0x336   :  { %2504 = vmatpush1.bf16.msra.mxu0 %v3557_v52  ;;  %2423 = vmatprep.subr.bf16.mxu1 %v3564_v53  ;;  %v3899_v52 = vld [vmem:[#allocation14 + $0x38] sm:$0xff]  }
 0x337   :  { %2505 = vmatprep.subr.bf16.mxu0 %v3566_v54  ;;  %v3900_v53 = vld [vmem:[#allocation14 + $0xb8] sm:$0xff]   ;;  %v3901_v54 = vld [vmem:[#allocation14 + $0x140] sm:$0xff]  }
 0x339   :  { %2424 = vmatpush1.bf16.msra.mxu1 %v3563_v59  ;;  %v881_v59 = vrot.slane %v4478_v56, %v336_v6 }
 0x33a   :  { %2506 = vmatpush1.bf16.msra.mxu0 %v3565_v61  ;;  %2425 = vmatprep.subr.bf16.mxu1 %v3572_v62  ;;  %v889_v61 = vrot.slane %v4478_v56, %v344_v7 }
 0x33b   :  { %2507 = vmatprep.subr.bf16.mxu0 %v3574_v5 }
 0x33d   :  { %2426 = vmatpush1.bf16.msra.mxu1 %v3571_v9 }
 0x33e   :  { %2508 = vmatpush1.bf16.msra.mxu0 %v3573_v10  ;;  %2427 = vmatprep.subr.bf16.mxu1 %v3580_v60 }
 0x33f   :  { %2509 = vmatprep.subr.bf16.mxu0 %v3582_v11 }
 0x341   :  { %2428 = vmatpush1.bf16.msra.mxu1 %v3579_v16 }
 0x342   :  { %2510 = vmatpush1.bf16.msra.mxu0 %v3581_v17  ;;  %2429 = vmatprep.subr.bf16.mxu1 %v3588_v18 }
 0x343   :  { %2511 = vmatprep.subr.bf16.mxu0 %v3590_v19 }
 0x345   :  { %2430 = vmatpush1.bf16.msra.mxu1 %v3587_v20 }
 0x346   :  { %2512 = vmatpush1.bf16.msra.mxu0 %v3589_v21  ;;  %3664 = vmatprep.subr.bf16.mxu1 %v3869_v22 }
 0x347   :  { %3686 = vmatprep.subr.bf16.mxu0 %v3870_v23 }
 0x348   :  { %2432 = vmatmul.mubr.bf16.vlgmr.msra.gmra.mrb[8].mxu1 %v4466_v0 }
 0x349   :  { %2514 = vmatmul.mubr.bf16.vlgmr.msra.gmra.mrb[12].mxu0 %v4466_v0  ;;  %3665 = vmatpush3.bf16.msra.mxu1 %v3871_v24  ;;  %v3884_v0 = vld [vmem:[#allocation14 + $0x98] sm:$0xff]  }
 0x34a   :  { %3687 = vmatpush3.bf16.msra.mxu0 %v3872_v25  ;;  %3666 = vmatprep.subr.bf16.mxu1 %v3873_v37 }
 0x34b   :  { %3688 = vmatprep.subr.bf16.mxu0 %v3874_v26  ;;  %v3903_v26 = vld [vmem:[#allocation14 + $0x100] sm:$0xff]  }
 0x34d   :  { %3667 = vmatpush3.bf16.msra.mxu1 %v3875_v27 }
 0x34e   :  { %3689 = vmatpush3.bf16.msra.mxu0 %v3876_v28  ;;  %3668 = vmatprep.subr.bf16.mxu1 %v3877_v29  ;;  %v3904_v29 = vld [vmem:[#allocation14 + $0x180] sm:$0xff]  }
 0x34f   :  { %3690 = vmatprep.subr.bf16.mxu0 %v3878_v30  ;;  %v3905_v30 = vld [vmem:[#allocation14 + $0x148] sm:$0xff]  }
 0x351   :  { %3669 = vmatpush3.bf16.msra.mxu1 %v3879_v31 }
 0x352   :  { %3691 = vmatpush3.bf16.msra.mxu0 %v3880_v32  ;;  %3670 = vmatprep.subr.bf16.mxu1 %v3881_v33  ;;  %v3906_v32 = vld [vmem:[#allocation14 + $0x1c8] sm:$0xff]  }
 0x353   :  { %3692 = vmatprep.subr.bf16.mxu0 %v3882_v34  ;;  %v3907_v33 = vld [vmem:[#allocation14 + $0x108] sm:$0xff]  }
 0x354   :  { %v3908_v34 = vld [vmem:[#allocation14 + $0x188] sm:$0xff]  }
 0x355   :  { %3671 = vmatpush3.bf16.msra.mxu1 %v3883_v35  ;;  %v3909_v35 = vld [vmem:[#allocation14 + $0x150] sm:$0xff]  }
 0x356   :  { %3693 = vmatpush3.bf16.msra.mxu0 %v3884_v0  ;;  %3672 = vmatprep.subr.bf16.mxu1 %v3885_v39  ;;  %v3910_v0 = vld [vmem:[#allocation14 + $0x1d0] sm:$0xff]  }
 0x357   :  { %3694 = vmatprep.subr.bf16.mxu0 %v3886_v36  ;;  %v3911_v39 = vld [vmem:[#allocation14 + $0x110] sm:$0xff]  }
 0x358   :  { %v3912_v36 = vld [vmem:[#allocation14 + $0x190] sm:$0xff]  }
 0x359   :  { %3673 = vmatpush3.bf16.msra.mxu1 %v3887_v38  ;;  %v3913_v38 = vld [vmem:[#allocation14 + $0x158] sm:$0xff]  }
 0x35a   :  { %3695 = vmatpush3.bf16.msra.mxu0 %v3888_v40  ;;  %3674 = vmatprep.subr.bf16.mxu1 %v3889_v42  ;;  %v3914_v40 = vld [vmem:[#allocation14 + $0x1d8] sm:$0xff]  }
 0x35b   :  { %3696 = vmatprep.subr.bf16.mxu0 %v3890_v43  ;;  %v3915_v42 = vld [vmem:[#allocation14 + $0x118] sm:$0xff]  }
 0x35c   :  { %v3916_v43 = vld [vmem:[#allocation14 + $0x198] sm:$0xff]  }
 0x35d   :  { %3675 = vmatpush3.bf16.msra.mxu1 %v3891_v44  ;;  %v3917_v44 = vld [vmem:[#allocation14 + $0x160] sm:$0xff]  }
 0x35e   :  { %3697 = vmatpush3.bf16.msra.mxu0 %v3892_v46  ;;  %3676 = vmatprep.subr.bf16.mxu1 %v3893_v45  ;;  %v3918_v46 = vld [vmem:[#allocation14 + $0x1e0] sm:$0xff]  }
 0x35f   :  { %3698 = vmatprep.subr.bf16.mxu0 %v3894_v47  ;;  %v3919_v45 = vld [vmem:[#allocation14 + $0x120] sm:$0xff]  }
 0x360   :  { %v3920_v47 = vld [vmem:[#allocation14 + $0x1a0] sm:$0xff]  }
 0x361   :  { %3677 = vmatpush3.bf16.msra.mxu1 %v3895_v48  ;;  %v3921_v48 = vld [vmem:[#allocation14 + $0x168] sm:$0xff]  }
 0x362   :  { %3699 = vmatpush3.bf16.msra.mxu0 %v3896_v49  ;;  %3678 = vmatprep.subr.bf16.mxu1 %v3897_v50  ;;  %v3922_v49 = vld [vmem:[#allocation14 + $0x1e8] sm:$0xff]  }
 0x363   :  { %3700 = vmatprep.subr.bf16.mxu0 %v3898_v51  ;;  %v3923_v50 = vld [vmem:[#allocation14 + $0x128] sm:$0xff]  }
 0x364   :  { %v3924_v51 = vld [vmem:[#allocation14 + $0x1a8] sm:$0xff]  }
 0x365   :  { %3679 = vmatpush3.bf16.msra.mxu1 %v3899_v52  ;;  %v3925_v52 = vld [vmem:[#allocation14 + $0x170] sm:$0xff]  }
 0x366   :  { %3701 = vmatpush3.bf16.msra.mxu0 %v3900_v53  ;;  %3708 = vmatprep.subr.bf16.mxu1 %v3901_v54  ;;  %v3926_v53 = vld [vmem:[#allocation14 + $0x1f0] sm:$0xff]  }
 0x367   :  { %3730 = vmatprep.subr.bf16.mxu0 %v3902_v55  ;;  %v3927_v54 = vld [vmem:[#allocation14 + $0x130] sm:$0xff]  }
 0x368   :  { %v3928_v55 = vld [vmem:[#allocation14 + $0x1b0] sm:$0xff]  }
 0x39b   :  { %v2269_v62 = vpop.f32.mrb[4].mxu1  ;;  %v2351_v5 = vpop.f32.mrb[8].mxu0 }
 0x39c   :  { %v3752_v63 = vadd.f32 %v2269_v62, %v877_v57  ;;  %v3754_v1 = vadd.f32 %v2351_v5, %v885_v58  ;;  %v2271_v2 = vpop.f32.mrb[5].mxu1  ;;  %v2353_v8 = vpop.f32.mrb[9].mxu0  ;;  %v3929_v57 = vld [vmem:[#allocation14 + $0x178] sm:$0xff]   ;;  %v892_v62 = vsub.s32 4, %v4426_v3  ;;  %v900_v5 = vsub.s32 6, %v4426_v3 }
 0x39d   :  { %v3753_v9 = vadd.f32 %v2271_v2, %v881_v59  ;;  %v3755_v4 = vadd.f32 %v2353_v8, %v889_v61  ;;  %v2273_v10 = vpop.f32.mrb[6].mxu1  ;;  %v2355_v60 = vpop.f32.mrb[10].mxu0  ;;  %v3930_v58 = vld [vmem:[#allocation14 + $0x1f8] sm:$0xff]  }
 0x39e   :  { %v2530_v11 = vmul.f32 1.442695, %v3752_v63  ;;  %v2534_v41 = vmul.f32 1.442695, %v3754_v1  ;;  %v2274_v6 = vpop.f32.mrb[7].mxu1  ;;  %v2356_v14 = vpop.f32.mrb[11].mxu0  ;;  %v893_v2 = vrot.slane %v4478_v56, %v892_v62  ;;  %v901_v8 = vrot.slane %v4478_v56, %v900_v5 }
 0x39f   :  { %v2532_v12 = vmul.f32 1.442695, %v3753_v9  ;;  %v2536_v13 = vmul.f32 1.442695, %v3755_v4  ;;  %vm2522_vm4 = vcmp.gt.f32.partialorder %v3752_v63, 0.0  ;;  %vm2524_vm5 = vcmp.gt.f32.partialorder %v3754_v1, 0.0 }
 0x3a0   :  { %3941 = vpow2.f32 %v2530_v11  ;;  %vm2523_vm6 = vcmp.gt.f32.partialorder %v3753_v9, 0.0  ;;  %vm2525_vm7 = vcmp.gt.f32.partialorder %v3755_v4, 0.0  ;;  %v3931_v59 = vld [vmem:[#allocation14 + $0x138] sm:$0xff]  }
 0x3a1   :  { %3943 = vpow2.f32 %v2534_v41  ;;  %v3932_v61 = vld [vmem:[#allocation14 + $0x1b8] sm:$0xff]  }
 0x3a2   :  { %3945 = vpow2.f32 %v2532_v12 }
 0x3a3   :  { %3947 = vpow2.f32 %v2536_v13 }
 0x3aa   :  { %v3942_v7 = vpop.eup %3941 }
 0x3ab   :  { %v3944_v15 = vpop.eup %3943  ;;  %v3591_v16 = vadd.f32 -1.0, %v3942_v7 }
 0x3ac   :  { %v3946_v17 = vpop.eup %3945  ;;  %v3593_v18 = vadd.f32 -1.0, %v3944_v15 }
 0x3ad   :  { %v3948_v19 = vpop.eup %3947  ;;  %v3592_v20 = vadd.f32 -1.0, %v3946_v17  ;;  %v2554_v21 = vsel %vm2522_vm4, %v3752_v63, %v3591_v16  ;;  %v896_v63 = vsub.s32 5, %v4426_v3 }
 0x3ae   :  { %v3594_v22 = vadd.f32 -1.0, %v3948_v19  ;;  %v2556_v23 = vsel %vm2524_vm5, %v3754_v1, %v3593_v18  ;;  %v2562_v27 = vpack.c.bf16 %v2554_v21, %v2554_v21  ;;  %v904_v1 = vsub.s32 7, %v4426_v3 }
 0x3af   :  { %v2555_v24 = vsel %vm2523_vm6, %v3753_v9, %v3592_v20  ;;  %v2564_v31 = vpack.c.bf16 %v2556_v23, %v2556_v23  ;;  %v897_v9 = vrot.slane %v4478_v56, %v896_v63 }
 0x3b0   :  { %v2563_v25 = vpack.c.bf16 %v2555_v24, %v2555_v24  ;;  %v2557_v37 = vsel %vm2525_vm7, %v3755_v4, %v3594_v22  ;;  %v905_v4 = vrot.slane %v4478_v56, %v904_v1 }
 0x3b1   :  { %v2565_v28 = vpack.c.bf16 %v2557_v37, %v2557_v37 }
 0x3b2   :  { %3121 = vmatprep.mubr.bf16.mxu1 %v2563_v25 }
 0x3b3   :  { %3161 = vmatprep.mubr.bf16.mxu0 %v2565_v28  ;;  %3122 = vmatmul.mubr.bf16.vlgmr.msra.gmra.mrb[12].mxu1 %v2562_v27 }
 0x3b4   :  { %3162 = vmatmul.mubr.bf16.vlgmr.msra.gmra.mrb[16].mxu0 %v2564_v31  ;;  %3709 = vmatpush3.bf16.msra.mxu1 %v3903_v26 }
 0x3b5   :  { %3731 = vmatpush3.bf16.msra.mxu0 %v3904_v29  ;;  %3710 = vmatprep.subr.bf16.mxu1 %v3905_v30 }
 0x3b6   :  { %3732 = vmatprep.subr.bf16.mxu0 %v3906_v32 }
 0x3b8   :  { %3711 = vmatpush3.bf16.msra.mxu1 %v3907_v33 }
 0x3b9   :  { %3733 = vmatpush3.bf16.msra.mxu0 %v3908_v34  ;;  %3712 = vmatprep.subr.bf16.mxu1 %v3909_v35 }
 0x3ba   :  { %3734 = vmatprep.subr.bf16.mxu0 %v3910_v0 }
 0x3bc   :  { %3713 = vmatpush3.bf16.msra.mxu1 %v3911_v39  ;;  %v3599_v39 = vld [vmem:[#allocation16] ss:$0 sm:$0xff] }
 0x3bd   :  { %3735 = vmatpush3.bf16.msra.mxu0 %v3912_v36  ;;  %3714 = vmatprep.subr.bf16.mxu1 %v3913_v38 }
 0x3be   :  { %3736 = vmatprep.subr.bf16.mxu0 %v3914_v40 }
 0x3c0   :  { %3715 = vmatpush3.bf16.msra.mxu1 %v3915_v42 }
 0x3c1   :  { %3737 = vmatpush3.bf16.msra.mxu0 %v3916_v43  ;;  %3716 = vmatprep.subr.bf16.mxu1 %v3917_v44 }
 0x3c2   :  { %3738 = vmatprep.subr.bf16.mxu0 %v3918_v46 }
 0x3c4   :  { %3717 = vmatpush3.bf16.msra.mxu1 %v3919_v45 }
 0x3c5   :  { %3739 = vmatpush3.bf16.msra.mxu0 %v3920_v47  ;;  %3718 = vmatprep.subr.bf16.mxu1 %v3921_v48 }
 0x3c6   :  { %3740 = vmatprep.subr.bf16.mxu0 %v3922_v49 }
 0x3c8   :  { %3719 = vmatpush3.bf16.msra.mxu1 %v3923_v50 }
 0x3c9   :  { %3741 = vmatpush3.bf16.msra.mxu0 %v3924_v51  ;;  %3720 = vmatprep.subr.bf16.mxu1 %v3925_v52 }
 0x3ca   :  { %3742 = vmatprep.subr.bf16.mxu0 %v3926_v53 }
 0x3cc   :  { %3721 = vmatpush3.bf16.msra.mxu1 %v3927_v54 }
 0x3cd   :  { %3743 = vmatpush3.bf16.msra.mxu0 %v3928_v55  ;;  %3722 = vmatprep.subr.bf16.mxu1 %v3929_v57 }
 0x3ce   :  { %3744 = vmatprep.subr.bf16.mxu0 %v3930_v58 }
 0x3d0   :  { %3723 = vmatpush3.bf16.msra.mxu1 %v3931_v59 }
 0x3d1   :  { %3745 = vmatpush3.bf16.msra.mxu0 %v3932_v61 }
 0x41b   :  { %v2433_v10 = vpop.f32.mrb[8].mxu1 }
 0x41c   :  { %v3756_v60 = vadd.f32 %v2433_v10, %v893_v2  ;;  %v2515_v11 = vpop.f32.mrb[12].mxu0  ;;  %v2435_v41 = vpop.f32.mrb[9].mxu1 }
 0x41d   :  { %v3758_v12 = vadd.f32 %v2515_v11, %v901_v8  ;;  %v3757_v13 = vadd.f32 %v2435_v41, %v897_v9  ;;  %v2517_v6 = vpop.f32.mrb[13].mxu0  ;;  %v2437_v14 = vpop.f32.mrb[10].mxu1 }
 0x41e   :  { %v2538_v7 = vmul.f32 1.442695, %v3756_v60  ;;  %v3759_v15 = vadd.f32 %v2517_v6, %v905_v4  ;;  %v2519_v16 = vpop.f32.mrb[14].mxu0  ;;  %v2438_v3 = vpop.f32.mrb[11].mxu1  ;;  %vm2526_vm8 = vcmp.gt.f32.partialorder %v3756_v60, 0.0 }
 0x41f   :  { %v2542_v17 = vmul.f32 1.442695, %v3758_v12  ;;  %v2540_v18 = vmul.f32 1.442695, %v3757_v13  ;;  %v2520_v20 = vpop.f32.mrb[15].mxu0  ;;  %vm2528_vm9 = vcmp.gt.f32.partialorder %v3758_v12, 0.0 }
 0x420   :  { %3949 = vpow2.f32 %v2538_v7  ;;  %v2544_v19 = vmul.f32 1.442695, %v3759_v15  ;;  %vm2527_vm10 = vcmp.gt.f32.partialorder %v3757_v13, 0.0  ;;  %vm2529_vm11 = vcmp.gt.f32.partialorder %v3759_v15, 0.0 }
 0x421   :  { %3951 = vpow2.f32 %v2542_v17 }
 0x422   :  { %3953 = vpow2.f32 %v2540_v18 }
 0x423   :  { %3955 = vpow2.f32 %v2544_v19 }
 0x42a   :  { %v3950_v56 = vpop.eup %3949 }
 0x42b   :  { %v3952_v21 = vpop.eup %3951  ;;  %v3595_v22 = vadd.f32 -1.0, %v3950_v56 }
 0x42c   :  { %v3954_v23 = vpop.eup %3953  ;;  %v3597_v24 = vadd.f32 -1.0, %v3952_v21 }
 0x42d   :  { %v3956_v25 = vpop.eup %3955  ;;  %v3596_v37 = vadd.f32 -1.0, %v3954_v23  ;;  %v2558_v26 = vsel %vm2526_vm8, %v3756_v60, %v3595_v22 }
 0x42e   :  { %v3598_v27 = vadd.f32 -1.0, %v3956_v25  ;;  %v2560_v28 = vsel %vm2528_vm9, %v3758_v12, %v3597_v24  ;;  %v2566_v32 = vpack.c.bf16 %v2558_v26, %v2558_v26 }
 0x42f   :  { %v2559_v29 = vsel %vm2527_vm10, %v3757_v13, %v3596_v37  ;;  %v2568_v34 = vpack.c.bf16 %v2560_v28, %v2560_v28 }
 0x430   :  { %v2567_v30 = vpack.c.bf16 %v2559_v29, %v2559_v29  ;;  %v2561_v31 = vsel %vm2529_vm11, %v3759_v15, %v3598_v27 }
 0x431   :  { %v2569_v33 = vpack.c.bf16 %v2561_v31, %v2561_v31 }
 0x432   :  { %3201 = vmatprep.mubr.bf16.mxu1 %v2567_v30 }
 0x433   :  { %3241 = vmatprep.mubr.bf16.mxu0 %v2569_v33  ;;  %3202 = vmatmul.mubr.bf16.vlgmr.msra.gmra.mrb[16].mxu1 %v2566_v32 }
 0x434   :  { %3242 = vmatmul.mubr.bf16.vlgmr.msra.gmra.mrb[20].mxu0 %v2568_v34 }
 0x486   :  { %v3680_v35 = vpop.f32.mrb[12].mxu1 }
 0x487   :  { %v3702_v0 = vpop.f32.mrb[16].mxu0  ;;  %v3681_v36 = vpop.f32.mrb[13].mxu1 }
 0x488   :  { %v3682_v38 = vadd.f32 %v3681_v36, %v3680_v35  ;;  %v3703_v40 = vpop.f32.mrb[17].mxu0  ;;  %v3683_v42 = vpop.f32.mrb[14].mxu1 }
 0x489   :  { %v3704_v43 = vadd.f32 %v3703_v40, %v3702_v0  ;;  %v3705_v44 = vpop.f32.mrb[18].mxu0  ;;  %v3684_v46 = vpop.f32.mrb[15].mxu1 }
 0x48a   :  { %v3124_v45 = vadd.f32 %v3682_v38, %v3599_v39  ;;  %v3706_v47 = vpop.f32.mrb[19].mxu0 }
 0x48c   :  { %v3164_v48 = vadd.f32 %v3704_v43, %v3124_v45 }
 0x48d   :  { %4166 = shalt.err (!%p4163_p6)
}
 0x48e   :  { %s4167_s15 = scalar_lea.hbm %s4534_s10, 128 }
 0x48f   :  { %p4168_p7 = scmp.ne.s32.totalorder %s4534_s10, %s4167_s15  ;;  %p4171_p8 = scmp.lt.u32.totalorder %s4167_s15, %s4534_s10 }
 0x491   :  { %p4173_p9 = pnand %p4171_p8, %p4168_p7 }
 0x493   :  { %4176 = shalt.err (!%p4173_p9)
}
 0x494   :  { %3269 = dma.vmem_to_hbm [thread:$0]  %s3267_s7, 128, %s4534_s10, [#allocation19]  }
 0x495   :  { %s4232_s5 = smov [#allocation17]  }
 0x496   :  { %s3256_s20 = sshll.u32 %s4232_s5, 4  ;;  %s3257_s20 = int_to_ptr.vmem [resolvable:$true] %s3256_s20 }
 0x497   :  { %s4177_s4 = scalar_lea.vmem %s3257_s20, 128  ;;  %p4182_p11 = scmp.lt.s32.totalorder %s3257_s20, %s3257_s20 }
 0x498   :  { %p4178_p10 = scmp.ne.s32.totalorder %s3257_s20, %s4177_s4  ;;  %p4183_p12 = scmp.lt.s32.totalorder %s4177_s4, %s4177_s4 }
 0x49a   :  { %p4184_p13 = por %p4183_p12, %p4182_p11 }
 0x49c   :  { %p4185_p0 = pnand %p4184_p13, %p4178_p10 }
 0x506   :  { %v3724_v49 = vpop.f32.mrb[16].mxu1 }
 0x507   :  { %v3746_v50 = vpop.f32.mrb[20].mxu0  ;;  %v3725_v51 = vpop.f32.mrb[17].mxu1 }
 0x508   :  { %v3726_v52 = vadd.f32 %v3725_v51, %v3724_v49  ;;  %v3747_v53 = vpop.f32.mrb[21].mxu0  ;;  %v3727_v54 = vpop.f32.mrb[18].mxu1 }
 0x509   :  { %v3748_v55 = vadd.f32 %v3747_v53, %v3746_v50  ;;  %v3749_v57 = vpop.f32.mrb[22].mxu0  ;;  %v3728_v58 = vpop.f32.mrb[19].mxu1 }
 0x50a   :  { %v3204_v59 = vadd.f32 %v3726_v52, %v3164_v48  ;;  %v3750_v61 = vpop.f32.mrb[23].mxu0 }
 0x50c   :  { %v3244_v62 = vadd.f32 %v3748_v55, %v3204_v59 }
 0x50e   :  { %3249 = vst [vmem:[#allocation17] sm:$0xff] %v3244_v62 }
 0x50f   :  { %4188 = shalt.err (!%p4185_p0)
}
 0x510   :  { %s4189_s22 = scalar_lea.hbm %s4533_s9, 128 }
 0x511   :  { %p4190_p1 = scmp.ne.s32.totalorder %s4533_s9, %s4189_s22  ;;  %p4193_p2 = scmp.lt.u32.totalorder %s4189_s22, %s4533_s9 }
 0x513   :  { %p4195_p3 = pnand %p4193_p2, %p4190_p1 }
 0x515   :  { %4198 = shalt.err (!%p4195_p3)
}
 0x516   :  { %3259 = dma.vmem_to_hbm [thread:$0]  %s3257_s20, 128, %s4533_s9, [#allocation4]  }
 0x517   :  { %4209 = dma.done.wait [#allocation4], 128  }
 0x518   :  { %4210 = vsyncadd [#allocation4], 4294967168 }
 0x519   :  { %4211 = dma.done.wait [#allocation19], 128  }
 0x51a   :  { %4212 = vsyncadd [#allocation19], 4294967168 }
 0x51b   :  { %3276 = vsyncpa [#allocation3], 1 }
 0x51c   :  { %3277 = vsyncpa [#allocation6], 1 }
 0x51d   :  { %3278 = vsyncpa [#allocation9], 1 }
 0x51e   :  { %3279 = vsyncpa [#allocation12], 1 }
 0x51f   :  { %3280 = vsyncpa [#allocation15], 1 }
 0x520   :  { %3281 = vsyncpa [#allocation4], 1 }
 0x521   :  { %3282 = vsyncpa [#allocation19], 1 }

</bundles_post_ra>
